<compile_context>
chip_gen: v6e
topology: v6e:2x2x1
jax: 0.10.0
libtpu: 0.0.40
codegen_flags: <defaults>
</compile_context>

<pallas_src>
import functools

import jax
import jax.numpy as jnp
from jax.experimental import pallas as pl
from jax.experimental.pallas import tpu as pltpu


# ---------------------------------------------------------------------------
# Kernels
# ---------------------------------------------------------------------------

def _se_kernel_lane_dense(x_ref, p_ref, w1t_ref, b1_ref, w2t_ref, b2_ref, r_ref,
                          o_ref, *, inv_hw):
    # x_ref / o_ref: (TB, C*HW) lane-dense slabs.
    # p_ref: (C*HW, C) 0/1 pooling matrix (x dtype)  -> squeeze on the MXU.
    # r_ref: (C, C*HW) 0/1 expansion matrix (f32)    -> gate broadcast on the MXU.
    # Squeeze: global average pool, f32 accumulation on the MXU.  The ref read is
    # consumed directly (no long-lived f32 copy of the block).
    s = jnp.dot(x_ref[...], p_ref[...],
                preferred_element_type=jnp.float32) * inv_hw            # (TB, C)
    # Excitation: 1x1 convs == dense layers on channels, f32 accumulation.
    h = jnp.maximum(
        jnp.dot(s, w1t_ref[...], preferred_element_type=jnp.float32) + b1_ref[...],
        0.0)                                                            # (TB, Cr)
    e = jax.nn.sigmoid(
        jnp.dot(h, w2t_ref[...], preferred_element_type=jnp.float32) + b2_ref[...])  # (TB, C)
    # Expand the per-channel gate back to the lane-dense layout on the MXU.
    gate = jnp.dot(e, r_ref[...], preferred_element_type=jnp.float32)  # (TB, C*HW)
    # Re-read x for the scale; multiply in the input dtype (halves VPU traffic
    # for bf16 inputs, identical for f32).
    xv = x_ref[...]
    o_ref[...] = xv * gate.astype(xv.dtype)


def _se_kernel_nchw(x_ref, w1t_ref, b1_ref, w2t_ref, b2_ref, o_ref, *, inv_hw):
    # Fallback path: x_ref / o_ref are (TB, C, HW).  Used when HW is already
    # 128-aligned (stores are lane-dense anyway) or when the pooling/expansion
    # matrices of the lane-dense path would be too large.
    # Squeeze directly from the ref read (no block-sized f32 temporary kept live).
    s = jnp.sum(x_ref[...].astype(jnp.float32), axis=-1) * inv_hw       # (TB, C)
    h = jnp.maximum(
        jnp.dot(s, w1t_ref[...], preferred_element_type=jnp.float32) + b1_ref[...],
        0.0)
    e = jax.nn.sigmoid(
        jnp.dot(h, w2t_ref[...], preferred_element_type=jnp.float32) + b2_ref[...])
    xv = x_ref[...]
    o_ref[...] = xv * e[:, :, None].astype(xv.dtype)


# ---------------------------------------------------------------------------
# Tiling / VMEM budgeting helpers
# ---------------------------------------------------------------------------

def _round_up(x, m):
    return ((x + m - 1) // m) * m


def _sublane_multiple(dtype):
    # VMEM tiling: (8, 128) for 32-bit, (16, 128) for 16-bit, (32, 128) for 8-bit.
    return max(8, 32 // jnp.dtype(dtype).itemsize)


def _vmem_caps():
    """(usable VMEM cap per core, TensorCores per chip heuristic)."""
    try:
        phys = int(pltpu.get_tpu_info().vmem_capacity_bytes)
    except Exception:
        phys = 64 << 20                      # conservative (v7x-class) fallback
    if phys >= (96 << 20):                   # v5e / v6e: 128 MiB VMEM, 1 TC/chip
        cap = min(phys - (28 << 20), 100 << 20)
        cores = 1
    else:                                    # v7x-class: 64 MiB VMEM, 2 TC/chip
        cap = max(phys - (24 << 20), phys // 2)
        cores = 2
    return cap, cores


def _pick_tb(B, block_bytes_fn, budget_bytes, target_steps, legal_fn):
    """Largest legal batch-tile that fits the budget and keeps >= target_steps."""
    cands = [d for d in range(1, B + 1) if B % d == 0 and legal_fn(d)]
    fits = [d for d in cands if 4 * block_bytes_fn(d) <= budget_bytes]
    if not fits:                             # nothing fits: take the smallest legal
        fits = [min(cands)]
    eff_target = min(target_steps, B)
    stepped = [d for d in fits if (B // d) >= eff_target]
    return max(stepped) if stepped else min(fits)


# ---------------------------------------------------------------------------
# Wrapper
# ---------------------------------------------------------------------------

def se_block(x, w1, b1, w2, b2):
    """SEBlock forward.  x: (B, C, H, W); w1: (Cr, C); b1: (Cr,); w2: (C, Cr); b2: (C,)."""
    B, C, H, W = x.shape
    Cr = w1.shape[0]
    HW = H * W
    CHW = C * HW
    dtype = x.dtype
    itemsize = jnp.dtype(dtype).itemsize
    sub = _sublane_multiple(dtype)
    inv_hw = 1.0 / HW

    w1t = w1.T.astype(jnp.float32)               # (C, Cr)
    w2t = w2.T.astype(jnp.float32)               # (Cr, C)
    b1r = b1.reshape(1, Cr).astype(jnp.float32)
    b2r = b2.reshape(1, C).astype(jnp.float32)

    vmem_cap, n_cores = _vmem_caps()
    target_steps = 4 * n_cores

    # Padded (layout-aware) sizes for the lane-dense path's pooling / expansion
    # matrices; the path is only used when they are small (typical deep layers).
    p_bytes = _round_up(CHW, sub) * _round_up(C, 128) * itemsize
    r_bytes = _round_up(C, 8) * _round_up(CHW, 128) * 4
    use_lane_dense = (HW % 128 != 0) and max(p_bytes, r_bytes) <= (4 << 20)

    small_param_bytes = 2 * 4 * (w1t.size + w2t.size + b1r.size + b2r.size)

    if use_lane_dense:
        row_bytes = _round_up(CHW, 128) * itemsize

        def block_bytes(tb):
            return _round_up(tb, sub) * row_bytes

        def legal(tb):
            # Second-minor block dim must be a sublane multiple or the full dim.
            return tb == B or tb % sub == 0

        param_bytes = small_param_bytes + 2 * (p_bytes + r_bytes)
        budget = max(vmem_cap - param_bytes - (6 << 20), 4 << 20)
        TB = _pick_tb(B, block_bytes, budget, target_steps, legal)
        steps = B // TB
        needed = 4 * block_bytes(TB) + param_bytes + (4 << 20)
        vmem_limit = int(min(max(needed, 16 << 20), vmem_cap))

        x_flat = x.reshape(B, CHW)               # free: NCHW is contiguous
        # 0/1 matrices: P sums each channel's HW lanes, R broadcasts the gate back.
        p_mat = jnp.repeat(jnp.eye(C, dtype=jnp.float32), HW, axis=0).astype(dtype)  # (CHW, C)
        r_mat = jnp.repeat(jnp.eye(C, dtype=jnp.float32), HW, axis=1)                # (C, CHW)

        cost = pl.CostEstimate(
            flops=int(2 * B * CHW * C + 4 * B * C * Cr + 2 * B * C * CHW + B * CHW),
            transcendentals=int(B * C),
            bytes_accessed=int(2 * B * CHW * itemsize + p_bytes + r_bytes
                               + small_param_bytes // 2),
        )

        out_flat = pl.pallas_call(
            functools.partial(_se_kernel_lane_dense, inv_hw=inv_hw),
            out_shape=jax.ShapeDtypeStruct((B, CHW), dtype),
            grid_spec=pltpu.PrefetchScalarGridSpec(
                num_scalar_prefetch=0,
                grid=(steps,),
                in_specs=[
                    pl.BlockSpec((TB, CHW), lambda b: (b, 0)),
                    pl.BlockSpec((CHW, C), lambda b: (0, 0)),
                    pl.BlockSpec((C, Cr), lambda b: (0, 0)),
                    pl.BlockSpec((1, Cr), lambda b: (0, 0)),
                    pl.BlockSpec((Cr, C), lambda b: (0, 0)),
                    pl.BlockSpec((1, C), lambda b: (0, 0)),
                    pl.BlockSpec((C, CHW), lambda b: (0, 0)),
                ],
                out_specs=pl.BlockSpec((TB, CHW), lambda b: (b, 0)),
            ),
            compiler_params=pltpu.CompilerParams(
                dimension_semantics=("parallel",),
                vmem_limit_bytes=vmem_limit,
            ),
            cost_estimate=cost,
        )(x_flat, p_mat, w1t, b1r, w2t, b2r, r_mat)
        return out_flat.reshape(B, C, H, W)

    # -------- fallback: (B, C, HW) blocks (lane axis = spatial positions) -----
    row_bytes = _round_up(C, sub) * _round_up(HW, 128) * itemsize  # padded per-batch

    def block_bytes(tb):
        return tb * row_bytes

    budget = max(vmem_cap - small_param_bytes - (6 << 20), 4 << 20)
    TB = _pick_tb(B, block_bytes, budget, target_steps, lambda tb: True)
    steps = B // TB
    needed = 4 * block_bytes(TB) + small_param_bytes + (4 << 20)
    vmem_limit = int(min(max(needed, 16 << 20), vmem_cap))

    x_flat = x.reshape(B, C, HW)                 # free: NCHW is contiguous
    cost = pl.CostEstimate(
        flops=int(2 * B * CHW + 4 * B * C * Cr),
        transcendentals=int(B * C),
        bytes_accessed=int(2 * B * CHW * itemsize + small_param_bytes // 2),
    )

    out_flat = pl.pallas_call(
        functools.partial(_se_kernel_nchw, inv_hw=inv_hw),
        out_shape=jax.ShapeDtypeStruct((B, C, HW), dtype),
        grid_spec=pltpu.PrefetchScalarGridSpec(
            num_scalar_prefetch=0,
            grid=(steps,),
            in_specs=[
                pl.BlockSpec((TB, C, HW), lambda b: (b, 0, 0)),
                pl.BlockSpec((C, Cr), lambda b: (0, 0)),
                pl.BlockSpec((1, Cr), lambda b: (0, 0)),
                pl.BlockSpec((Cr, C), lambda b: (0, 0)),
                pl.BlockSpec((1, C), lambda b: (0, 0)),
            ],
            out_specs=pl.BlockSpec((TB, C, HW), lambda b: (b, 0, 0)),
        ),
        compiler_params=pltpu.CompilerParams(
            dimension_semantics=("parallel",),
            vmem_limit_bytes=vmem_limit,
        ),
        cost_estimate=cost,
    )(x_flat, w1t, b1r, w2t, b2r)
    return out_flat.reshape(B, C, H, W)


# ---------------------------------------------------------------------------
# Pure-JAX reference (mirrors the PyTorch forward, NCHW)
# ---------------------------------------------------------------------------

def se_block_ref(x, w1, b1, w2, b2):
    hp = jax.lax.Precision.HIGHEST
    s = jnp.mean(x, axis=(2, 3))                                   # (B, C)
    h = jax.nn.relu(jnp.dot(s, w1.T, precision=hp) + b1)           # (B, Cr)
    e = jax.nn.sigmoid(jnp.dot(h, w2.T, precision=hp) + b2)        # (B, C)
    return x * e[:, :, None, None]


if __name__ == "__main__":
    def run_case(B, C, H, W, reduction, key):
        Cr = max(1, C // reduction)
        kx, kw1, kb1, kw2, kb2 = jax.random.split(key, 5)
        x = jax.random.normal(kx, (B, C, H, W), dtype=jnp.float32)
        # Shapes match nn.Conv2d(C, Cr, 1) / nn.Conv2d(Cr, C, 1) weights + biases.
        w1 = jax.random.normal(kw1, (Cr, C), dtype=jnp.float32) * 0.1
        b1 = jax.random.normal(kb1, (Cr,), dtype=jnp.float32) * 0.1
        w2 = jax.random.normal(kw2, (C, Cr), dtype=jnp.float32) * 0.1
        b2 = jax.random.normal(kb2, (C,), dtype=jnp.float32) * 0.1

        out = jax.block_until_ready(se_block(x, w1, b1, w2, b2))
        ref = se_block_ref(x, w1, b1, w2, b2)
        assert out.shape == (B, C, H, W)
        # Tolerance: the MXU squeeze/gate matmuls may round operands at ~bf16
        # granularity depending on the compiler's f32 matmul precision (<= ~0.4%
        # relative on the gate); real bugs produce errors orders of magnitude
        # above this bound.
        ok = jnp.all(jnp.abs(out - ref) <= 2e-2 * jnp.abs(ref) + 5e-4)
        assert bool(ok), float(jnp.max(jnp.abs(out - ref)))

    key = jax.random.PRNGKey(0)
    k1, k2, k3 = jax.random.split(key, 3)
    # Lane-dense path, single grid step (small batch).
    run_case(2, 32, 8, 8, 16, k1)
    # Lane-dense path, batch-tiled grid (multiple pipeline steps).
    run_case(32, 64, 8, 8, 16, k2)
    # HW == 128 (already lane-aligned) -> exercises the NCHW fallback kernel.
    run_case(4, 32, 16, 8, 16, k3)

    print("KERNEL_OK")
</pallas_src>

<mosaic_0001>
module attributes {stable_mosaic.version = 11 : i64} {
  func.func @_se_kernel_lane_dense(%arg0: i32, %arg1: memref<2x2048xf32, #tpu.memory_space<vmem>>, %arg2: memref<2048x32xf32, #tpu.memory_space<vmem>>, %arg3: memref<32x2xf32, #tpu.memory_space<vmem>>, %arg4: memref<1x2xf32, #tpu.memory_space<vmem>>, %arg5: memref<2x32xf32, #tpu.memory_space<vmem>>, %arg6: memref<1x32xf32, #tpu.memory_space<vmem>>, %arg7: memref<32x2048xf32, #tpu.memory_space<vmem>>, %arg8: memref<2x2048xf32, #tpu.memory_space<vmem>>) attributes {dimension_semantics = [#tpu.dimension_semantics<parallel>], iteration_bounds = array<i64: 1>, scalar_prefetch = 0 : i64, scratch_operands = 0 : i64, tpu.core_type = #tpu.core_type<tc>, window_params = [{transform_indices = @transform_0, window_bounds = array<i64: 2, 2048>}, {pipeline_mode = #tpu.pipeline_mode<synchronous>, transform_indices = @transform_1, window_bounds = array<i64: 2048, 32>}, {pipeline_mode = #tpu.pipeline_mode<synchronous>, transform_indices = @transform_2, window_bounds = array<i64: 32, 2>}, {pipeline_mode = #tpu.pipeline_mode<synchronous>, transform_indices = @transform_3, window_bounds = array<i64: 1, 2>}, {pipeline_mode = #tpu.pipeline_mode<synchronous>, transform_indices = @transform_4, window_bounds = array<i64: 2, 32>}, {pipeline_mode = #tpu.pipeline_mode<synchronous>, transform_indices = @transform_5, window_bounds = array<i64: 1, 32>}, {pipeline_mode = #tpu.pipeline_mode<synchronous>, transform_indices = @transform_6, window_bounds = array<i64: 32, 2048>}, {transform_indices = @transform_7, window_bounds = array<i64: 2, 2048>}]} {
    %c0 = arith.constant 0 : index
    %c0_0 = arith.constant 0 : index
    %0 = vector.load %arg1[%c0, %c0_0] : memref<2x2048xf32, #tpu.memory_space<vmem>>, vector<2x2048xf32>
    %c0_1 = arith.constant 0 : index
    %c0_2 = arith.constant 0 : index
    %1 = vector.load %arg2[%c0_1, %c0_2] : memref<2048x32xf32, #tpu.memory_space<vmem>>, vector<2048x32xf32>
    %cst = arith.constant dense<0.000000e+00> : vector<2x32xf32>
    %2 = tpu.matmul %0, %1, %cst {dimension_numbers = #tpu.dot_dimension_numbers<[1], [0], [0], [1], [0, 0, 1, 1], [], []>} : vector<2x2048xf32>, vector<2048x32xf32>, vector<2x32xf32> -> vector<2x32xf32>
    %cst_3 = arith.constant 1.562500e-02 : f32
    %3 = vector.broadcast %cst_3 : f32 to vector<2x32xf32>
    %4 = arith.mulf %2, %3 : vector<2x32xf32>
    %c0_4 = arith.constant 0 : index
    %c0_5 = arith.constant 0 : index
    %5 = vector.load %arg3[%c0_4, %c0_5] : memref<32x2xf32, #tpu.memory_space<vmem>>, vector<32x2xf32>
    %cst_6 = arith.constant dense<0.000000e+00> : vector<2x2xf32>
    %6 = tpu.matmul %4, %5, %cst_6 {dimension_numbers = #tpu.dot_dimension_numbers<[1], [0], [0], [1], [0, 0, 1, 1], [], []>} : vector<2x32xf32>, vector<32x2xf32>, vector<2x2xf32> -> vector<2x2xf32>
    %c0_7 = arith.constant 0 : index
    %c0_8 = arith.constant 0 : index
    %7 = vector.load %arg4[%c0_7, %c0_8] : memref<1x2xf32, #tpu.memory_space<vmem>>, vector<1x2xf32>
    %8 = vector.broadcast %7 : vector<1x2xf32> to vector<2x2xf32>
    %9 = arith.addf %6, %8 : vector<2x2xf32>
    %cst_9 = arith.constant 0.000000e+00 : f32
    %10 = vector.broadcast %cst_9 : f32 to vector<2x2xf32>
    %11 = arith.maximumf %9, %10 : vector<2x2xf32>
    %c0_10 = arith.constant 0 : index
    %c0_11 = arith.constant 0 : index
    %12 = vector.load %arg5[%c0_10, %c0_11] : memref<2x32xf32, #tpu.memory_space<vmem>>, vector<2x32xf32>
    %cst_12 = arith.constant dense<0.000000e+00> : vector<2x32xf32>
    %13 = tpu.matmul %11, %12, %cst_12 {dimension_numbers = #tpu.dot_dimension_numbers<[1], [0], [0], [1], [0, 0, 1, 1], [], []>} : vector<2x2xf32>, vector<2x32xf32>, vector<2x32xf32> -> vector<2x32xf32>
    %c0_13 = arith.constant 0 : index
    %c0_14 = arith.constant 0 : index
    %14 = vector.load %arg6[%c0_13, %c0_14] : memref<1x32xf32, #tpu.memory_space<vmem>>, vector<1x32xf32>
    %15 = vector.broadcast %14 : vector<1x32xf32> to vector<2x32xf32>
    %16 = arith.addf %13, %15 : vector<2x32xf32>
    %17 = arith.negf %16 : vector<2x32xf32>
    %18 = math.exp %17 : vector<2x32xf32>
    %cst_15 = arith.constant 1.000000e+00 : f32
    %19 = vector.broadcast %cst_15 : f32 to vector<2x32xf32>
    %20 = arith.addf %19, %18 : vector<2x32xf32>
    %21 = arith.divf %19, %20 : vector<2x32xf32>
    %c0_16 = arith.constant 0 : index
    %c0_17 = arith.constant 0 : index
    %22 = vector.load %arg7[%c0_16, %c0_17] : memref<32x2048xf32, #tpu.memory_space<vmem>>, vector<32x2048xf32>
    %cst_18 = arith.constant dense<0.000000e+00> : vector<2x2048xf32>
    %23 = tpu.matmul %21, %22, %cst_18 {dimension_numbers = #tpu.dot_dimension_numbers<[1], [0], [0], [1], [0, 0, 1, 1], [], []>} : vector<2x32xf32>, vector<32x2048xf32>, vector<2x2048xf32> -> vector<2x2048xf32>
    %c0_19 = arith.constant 0 : index
    %c0_20 = arith.constant 0 : index
    %24 = vector.load %arg1[%c0_19, %c0_20] : memref<2x2048xf32, #tpu.memory_space<vmem>>, vector<2x2048xf32>
    %25 = arith.mulf %24, %23 : vector<2x2048xf32>
    %c0_21 = arith.constant 0 : index
    %c0_22 = arith.constant 0 : index
    %26 = vector.load %arg8[%c0_21, %c0_22] : memref<2x2048xf32, #tpu.memory_space<vmem>>, vector<2x2048xf32>
    tpu.vector_store %arg8[%c0_21, %c0_22], %25 {strides = array<i32>} : memref<2x2048xf32, #tpu.memory_space<vmem>>, vector<2x2048xf32>,
    return
  }
  func.func @transform_0(%arg0: i32) -> (i32, i32) {
    %c0_i32 = arith.constant 0 : i32
    %c0_i32_0 = arith.constant 0 : i32
    return %arg0, %c0_i32 : i32, i32
  }
  func.func @transform_1(%arg0: i32) -> (i32, i32) {
    %c0_i32 = arith.constant 0 : i32
    %c0_i32_0 = arith.constant 0 : i32
    %c0_i32_1 = arith.constant 0 : i32
    return %c0_i32, %c0_i32_0 : i32, i32
  }
  func.func @transform_2(%arg0: i32) -> (i32, i32) {
    %c0_i32 = arith.constant 0 : i32
    %c0_i32_0 = arith.constant 0 : i32
    %c0_i32_1 = arith.constant 0 : i32
    return %c0_i32, %c0_i32_0 : i32, i32
  }
  func.func @transform_3(%arg0: i32) -> (i32, i32) {
    %c0_i32 = arith.constant 0 : i32
    %c0_i32_0 = arith.constant 0 : i32
    %c0_i32_1 = arith.constant 0 : i32
    return %c0_i32, %c0_i32_0 : i32, i32
  }
  func.func @transform_4(%arg0: i32) -> (i32, i32) {
    %c0_i32 = arith.constant 0 : i32
    %c0_i32_0 = arith.constant 0 : i32
    %c0_i32_1 = arith.constant 0 : i32
    return %c0_i32, %c0_i32_0 : i32, i32
  }
  func.func @transform_5(%arg0: i32) -> (i32, i32) {
    %c0_i32 = arith.constant 0 : i32
    %c0_i32_0 = arith.constant 0 : i32
    %c0_i32_1 = arith.constant 0 : i32
    return %c0_i32, %c0_i32_0 : i32, i32
  }
  func.func @transform_6(%arg0: i32) -> (i32, i32) {
    %c0_i32 = arith.constant 0 : i32
    %c0_i32_0 = arith.constant 0 : i32
    %c0_i32_1 = arith.constant 0 : i32
    return %c0_i32, %c0_i32_0 : i32, i32
  }
  func.func @transform_7(%arg0: i32) -> (i32, i32) {
    %c0_i32 = arith.constant 0 : i32
    %c0_i32_0 = arith.constant 0 : i32
    return %arg0, %c0_i32 : i32, i32
  }
}

</mosaic_0001>

<bundles_post_ra>
// kernel: tpu_custom_call.1
= control target key start
LH: loop header
LB: loop body
LE: loop exit
PB: predicated region body
PF: predicated region fallthrough
CT: control target
= control target key end

     0   :  { %v2212_v30 = vmov 1983009808   ;;  %v295_v32 = vlaneseq  ;;  %s3322_s0 = inlined_call_operand.vmem [shape: f32[2,2048], index: 0, kind: input, shape index: {}]   ;;  %s3323_s1 = inlined_call_operand.vmem [shape: f32[2048,32], index: 1, kind: input, shape index: {}]   ;;  %s3324_s2 = inlined_call_operand.vmem [shape: f32[32,2], index: 2, kind: input, shape index: {}]   ;;  %s3325_s3 = inlined_call_operand.vmem [shape: f32[1,2], index: 3, kind: input, shape index: {}]   ;;  %s3326_s4 = inlined_call_operand.vmem [shape: f32[2,32], index: 4, kind: input, shape index: {}]   ;;  %s3327_s5 = inlined_call_operand.vmem [shape: f32[1,32], index: 5, kind: input, shape index: {}]   ;;  %s3328_s6 = inlined_call_operand.vmem [shape: f32[32,2048], index: 6, kind: input, shape index: {}]   ;;  %s3329_s7 = inlined_call_operand.hbm [shape: f32[2,2048], index: 7, kind: output, shape index: {}]  }
   0x1   :  { %v62_v0 = vld [vmem:[%s3323_s1 + $0xf8] sm:$0xff]  ;;  %v61_v4 = vld [vmem:[%s3323_s1 + $0xf0] sm:$0xff]  ;;  %v60_v8 = vld [vmem:[%s3323_s1 + $0xe8] sm:$0xff]  ;;  %v293_v31 = vunpack.c.l.s4 %v2212_v30 }
   0x2   :  { %v94_v1 = vld [vmem:[%s3323_s1 + $0x1f8] sm:$0xff]  ;;  %1873 = vmatprep.subr.mxu0 %v62_v0  ;;  %v93_v5 = vld [vmem:[%s3323_s1 + $0x1f0] sm:$0xff]  ;;  %v92_v9 = vld [vmem:[%s3323_s1 + $0x1e8] sm:$0xff]  ;;  %v296_v42 = vshrl.u32 %v295_v32, 7 }
   0x3   :  { %v46_v2 = vld [vmem:[%s3323_s1 + $0x78] sm:$0xff]  ;;  %1908 = vmatprep.subr.mxu1 %v94_v1  ;;  %v45_v6 = vld [vmem:[%s3323_s1 + $0x70] sm:$0xff]  ;;  %v44_v10 = vld [vmem:[%s3323_s1 + $0x68] sm:$0xff]  ;;  %v294_v41 = vunpack.c.0.s8 %v293_v31 }
   0x4   :  { %v78_v3 = vld [vmem:[%s3323_s1 + $0x178] sm:$0xff]  ;;  %1874 = vmatpush3.msra.mxu0 %v46_v2  ;;  %v77_v7 = vld [vmem:[%s3323_s1 + $0x170] sm:$0xff]  ;;  %v76_v11 = vld [vmem:[%s3323_s1 + $0x168] sm:$0xff] }
   0x5   :  { %1909 = vmatpush3.msra.mxu1 %v78_v3  ;;  %1875 = vmatprep.subr.mxu0 %v61_v4  ;;  %v59_v12 = vld [vmem:[%s3323_s1 + $0xe0] sm:$0xff]  ;;  %v58_v16 = vld [vmem:[%s3323_s1 + $0xd8] sm:$0xff]  ;;  %v57_v20 = vld [vmem:[%s3323_s1 + $0xd0] sm:$0xff]  ;;  %v2394_v51 = vsub.s32 %v294_v41, %v296_v42 }
   0x6   :  { %1910 = vmatprep.subr.mxu1 %v93_v5  ;;  %1876 = vmatpush3.msra.mxu0 %v45_v6  ;;  %v91_v13 = vld [vmem:[%s3323_s1 + $0x1e0] sm:$0xff]  ;;  %v90_v17 = vld [vmem:[%s3323_s1 + $0x1d8] sm:$0xff]  ;;  %v89_v21 = vld [vmem:[%s3323_s1 + $0x1d0] sm:$0xff] }
   0x7   :  { %1911 = vmatpush3.msra.mxu1 %v77_v7  ;;  %1877 = vmatprep.subr.mxu0 %v60_v8  ;;  %v43_v14 = vld [vmem:[%s3323_s1 + $0x60] sm:$0xff]  ;;  %v42_v18 = vld [vmem:[%s3323_s1 + $0x58] sm:$0xff]  ;;  %v41_v22 = vld [vmem:[%s3323_s1 + $0x50] sm:$0xff] }
   0x8   :  { %1912 = vmatprep.subr.mxu1 %v92_v9  ;;  %v75_v15 = vld [vmem:[%s3323_s1 + $0x160] sm:$0xff]  ;;  %1878 = vmatpush3.msra.mxu0 %v44_v10  ;;  %v74_v19 = vld [vmem:[%s3323_s1 + $0x158] sm:$0xff]  ;;  %v73_v23 = vld [vmem:[%s3323_s1 + $0x150] sm:$0xff] }
   0x9   :  { %1913 = vmatpush3.msra.mxu1 %v76_v11  ;;  %1879 = vmatprep.subr.mxu0 %v59_v12  ;;  %v56_v24 = vld [vmem:[%s3323_s1 + $0xc8] sm:$0xff]  ;;  %v55_v28 = vld [vmem:[%s3323_s1 + $0xc0] sm:$0xff]  ;;  %v54_v35 = vld [vmem:[%s3323_s1 + $0xb8] sm:$0xff] }
   0xa   :  { %1914 = vmatprep.subr.mxu1 %v91_v13  ;;  %1880 = vmatpush3.msra.mxu0 %v43_v14  ;;  %v88_v25 = vld [vmem:[%s3323_s1 + $0x1c8] sm:$0xff]  ;;  %v87_v29 = vld [vmem:[%s3323_s1 + $0x1c0] sm:$0xff]  ;;  %v86_v36 = vld [vmem:[%s3323_s1 + $0x1b8] sm:$0xff] }
   0xb   :  { %1915 = vmatpush3.msra.mxu1 %v75_v15  ;;  %1881 = vmatprep.subr.mxu0 %v58_v16  ;;  %v40_v26 = vld [vmem:[%s3323_s1 + $0x48] sm:$0xff]  ;;  %v39_v33 = vld [vmem:[%s3323_s1 + $0x40] sm:$0xff]  ;;  %v38_v37 = vld [vmem:[%s3323_s1 + $0x38] sm:$0xff] }
   0xc   :  { %1916 = vmatprep.subr.mxu1 %v90_v17  ;;  %1882 = vmatpush3.msra.mxu0 %v42_v18  ;;  %v72_v27 = vld [vmem:[%s3323_s1 + $0x148] sm:$0xff]  ;;  %v71_v34 = vld [vmem:[%s3323_s1 + $0x140] sm:$0xff]  ;;  %v70_v38 = vld [vmem:[%s3323_s1 + $0x138] sm:$0xff] }
   0xd   :  { %1917 = vmatpush3.msra.mxu1 %v74_v19  ;;  %1883 = vmatprep.subr.mxu0 %v57_v20  ;;  %v53_v39 = vld [vmem:[%s3323_s1 + $0xb0] sm:$0xff]  ;;  %v52_v45 = vld [vmem:[%s3323_s1 + $0xa8] sm:$0xff]  ;;  %v51_v49 = vld [vmem:[%s3323_s1 + $0xa0] sm:$0xff] }
   0xe   :  { %1918 = vmatprep.subr.mxu1 %v89_v21  ;;  %1884 = vmatpush3.msra.mxu0 %v41_v22  ;;  %v85_v40 = vld [vmem:[%s3323_s1 + $0x1b0] sm:$0xff]  ;;  %v84_v46 = vld [vmem:[%s3323_s1 + $0x1a8] sm:$0xff]  ;;  %v83_v50 = vld [vmem:[%s3323_s1 + $0x1a0] sm:$0xff] }
   0xf   :  { %1919 = vmatpush3.msra.mxu1 %v73_v23  ;;  %1885 = vmatprep.subr.mxu0 %v56_v24  ;;  %v37_v43 = vld [vmem:[%s3323_s1 + $0x30] sm:$0xff]  ;;  %v36_v47 = vld [vmem:[%s3323_s1 + $0x28] sm:$0xff]  ;;  %v35_v52 = vld [vmem:[%s3323_s1 + $0x20] sm:$0xff] }
  0x10   :  { %1920 = vmatprep.subr.mxu1 %v88_v25  ;;  %1886 = vmatpush3.msra.mxu0 %v40_v26  ;;  %v69_v44 = vld [vmem:[%s3323_s1 + $0x130] sm:$0xff]  ;;  %v68_v48 = vld [vmem:[%s3323_s1 + $0x128] sm:$0xff]  ;;  %v67_v53 = vld [vmem:[%s3323_s1 + $0x120] sm:$0xff] }
  0x11   :  { %1921 = vmatpush3.msra.mxu1 %v72_v27  ;;  %1887 = vmatprep.subr.mxu0 %v55_v28  ;;  %v27_v54 = vld [vmem:[%s3322_s0] sm:$0xff]  ;;  %v50_v55 = vld [vmem:[%s3323_s1 + $0x98] sm:$0xff]  ;;  %v49_v60 = vld [vmem:[%s3323_s1 + $0x90] sm:$0xff] }
  0x12   :  { %1922 = vmatprep.subr.mxu1 %v87_v29  ;;  %1888 = vmatpush3.msra.mxu0 %v39_v33  ;;  %v82_v56 = vld [vmem:[%s3323_s1 + $0x198] sm:$0xff]  ;;  %v291_v57 = vcombine.high %v27_v54, %v27_v54  ;;  %v81_v61 = vld [vmem:[%s3323_s1 + $0x190] sm:$0xff]  ;;  %v298_v62 = vrot.slane %v27_v54, %v2394_v51  ;;  %v48_v2 = vld [vmem:[%s3323_s1 + $0x88] sm:$0xff] }
  0x13   :  { %1923 = vmatpush3.msra.mxu1 %v71_v34  ;;  %1889 = vmatprep.subr.mxu0 %v54_v35  ;;  %v34_v58 = vld [vmem:[%s3323_s1 + $0x18] sm:$0xff]  ;;  %v33_v63 = vld [vmem:[%s3323_s1 + $0x10] sm:$0xff]  ;;  %v80_v3 = vld [vmem:[%s3323_s1 + $0x188] sm:$0xff] }
  0x14   :  { %1924 = vmatprep.subr.mxu1 %v86_v36  ;;  %1890 = vmatpush3.msra.mxu0 %v38_v37  ;;  %v66_v59 = vld [vmem:[%s3323_s1 + $0x118] sm:$0xff]  ;;  %v65_v0 = vld [vmem:[%s3323_s1 + $0x110] sm:$0xff]  ;;  %v305_v1 = vrot.slane %v291_v57, %v2394_v51  ;;  %v32_v4 = vld [vmem:[%s3323_s1 + $0x8] sm:$0xff]  ;;  %v306_v8 = vcombine.high %v298_v62, %v298_v62 }
  0x15   :  { %1925 = vmatpush3.msra.mxu1 %v70_v38  ;;  %1891 = vmatprep.subr.mxu0 %v53_v39  ;;  %v64_v5 = vld [vmem:[%s3323_s1 + $0x108] sm:$0xff]  ;;  %v47_v6 = vld [vmem:[%s3323_s1 + $0x80] sm:$0xff]  ;;  %v126_v12 = vld [vmem:[%s3323_s1 + $0x2f8] sm:$0xff] }
  0x16   :  { %1926 = vmatprep.subr.mxu1 %v85_v40  ;;  %1892 = vmatpush3.msra.mxu0 %v37_v43  ;;  %v79_v7 = vld [vmem:[%s3323_s1 + $0x180] sm:$0xff]  ;;  %v307_v10 = vcombine.high %v305_v1, %v305_v1  ;;  %v158_v13 = vld [vmem:[%s3323_s1 + $0x3f8] sm:$0xff]  ;;  %v125_v16 = vld [vmem:[%s3323_s1 + $0x2f0] sm:$0xff] }
  0x17   :  { %1927 = vmatpush3.msra.mxu1 %v69_v44  ;;  %1893 = vmatprep.subr.mxu0 %v52_v45  ;;  %v31_v9 = vld [vmem:[%s3323_s1] sm:$0xff]  ;;  %v110_v14 = vld [vmem:[%s3323_s1 + $0x278] sm:$0xff]  ;;  %v157_v17 = vld [vmem:[%s3323_s1 + $0x3f0] sm:$0xff] }
  0x18   :  { %1928 = vmatprep.subr.mxu1 %v84_v46  ;;  %1894 = vmatpush3.msra.mxu0 %v36_v47  ;;  %v63_v11 = vld [vmem:[%s3323_s1 + $0x100] sm:$0xff]  ;;  %v142_v15 = vld [vmem:[%s3323_s1 + $0x378] sm:$0xff]  ;;  %v109_v18 = vld [vmem:[%s3323_s1 + $0x270] sm:$0xff] }
  0x19   :  { %1929 = vmatpush3.msra.mxu1 %v68_v48  ;;  %1895 = vmatprep.subr.mxu0 %v51_v49  ;;  %v141_v19 = vld [vmem:[%s3323_s1 + $0x370] sm:$0xff]  ;;  %v124_v20 = vld [vmem:[%s3323_s1 + $0x2e8] sm:$0xff]  ;;  %v123_v24 = vld [vmem:[%s3323_s1 + $0x2e0] sm:$0xff] }
  0x1a   :  { %1930 = vmatprep.subr.mxu1 %v83_v50  ;;  %1896 = vmatpush3.msra.mxu0 %v35_v52  ;;  %v156_v21 = vld [vmem:[%s3323_s1 + $0x3e8] sm:$0xff]  ;;  %v155_v25 = vld [vmem:[%s3323_s1 + $0x3e0] sm:$0xff]  ;;  %v122_v28 = vld [vmem:[%s3323_s1 + $0x2d8] sm:$0xff] }
  0x1b   :  { %1931 = vmatpush3.msra.mxu1 %v67_v53  ;;  %1897 = vmatprep.subr.mxu0 %v50_v55  ;;  %v108_v22 = vld [vmem:[%s3323_s1 + $0x268] sm:$0xff]  ;;  %v107_v26 = vld [vmem:[%s3323_s1 + $0x260] sm:$0xff]  ;;  %v154_v29 = vld [vmem:[%s3323_s1 + $0x3d8] sm:$0xff] }
  0x1c   :  { %1932 = vmatprep.subr.mxu1 %v82_v56  ;;  %1898 = vmatpush3.msra.mxu0 %v34_v58  ;;  %v140_v23 = vld [vmem:[%s3323_s1 + $0x368] sm:$0xff]  ;;  %v139_v27 = vld [vmem:[%s3323_s1 + $0x360] sm:$0xff]  ;;  %v106_v30 = vld [vmem:[%s3323_s1 + $0x258] sm:$0xff] }
  0x1d   :  { %1933 = vmatpush3.msra.mxu1 %v66_v59  ;;  %1899 = vmatprep.subr.mxu0 %v49_v60  ;;  %v138_v31 = vld [vmem:[%s3323_s1 + $0x358] sm:$0xff]  ;;  %v121_v32 = vld [vmem:[%s3323_s1 + $0x2d0] sm:$0xff]  ;;  %v120_v36 = vld [vmem:[%s3323_s1 + $0x2c8] sm:$0xff] }
  0x1e   :  { %1934 = vmatprep.subr.mxu1 %v81_v61  ;;  %1900 = vmatpush3.msra.mxu0 %v33_v63  ;;  %v153_v33 = vld [vmem:[%s3323_s1 + $0x3d0] sm:$0xff]  ;;  %v152_v37 = vld [vmem:[%s3323_s1 + $0x3c8] sm:$0xff]  ;;  %v119_v40 = vld [vmem:[%s3323_s1 + $0x2c0] sm:$0xff] }
  0x1f   :  { %1935 = vmatpush3.msra.mxu1 %v65_v0  ;;  %1901 = vmatprep.subr.mxu0 %v48_v2  ;;  %v105_v34 = vld [vmem:[%s3323_s1 + $0x250] sm:$0xff]  ;;  %v104_v38 = vld [vmem:[%s3323_s1 + $0x248] sm:$0xff]  ;;  %v151_v41 = vld [vmem:[%s3323_s1 + $0x3c0] sm:$0xff] }
  0x20   :  { %1936 = vmatprep.subr.mxu1 %v80_v3  ;;  %1902 = vmatpush3.msra.mxu0 %v32_v4  ;;  %v137_v35 = vld [vmem:[%s3323_s1 + $0x350] sm:$0xff]  ;;  %v136_v39 = vld [vmem:[%s3323_s1 + $0x348] sm:$0xff]  ;;  %v103_v42 = vld [vmem:[%s3323_s1 + $0x240] sm:$0xff] }
  0x21   :  { %1937 = vmatpush3.msra.mxu1 %v64_v5  ;;  %1903 = vmatprep.subr.mxu0 %v47_v6  ;;  %v135_v43 = vld [vmem:[%s3323_s1 + $0x340] sm:$0xff]  ;;  %v118_v44 = vld [vmem:[%s3323_s1 + $0x2b8] sm:$0xff]  ;;  %v117_v48 = vld [vmem:[%s3323_s1 + $0x2b0] sm:$0xff] }
  0x22   :  { %1938 = vmatprep.subr.mxu1 %v79_v7  ;;  %1904 = vmatpush3.msra.mxu0 %v31_v9  ;;  %v150_v45 = vld [vmem:[%s3323_s1 + $0x3b8] sm:$0xff]  ;;  %v149_v49 = vld [vmem:[%s3323_s1 + $0x3b0] sm:$0xff]  ;;  %v116_v53 = vld [vmem:[%s3323_s1 + $0x2a8] sm:$0xff] }
  0x23   :  { %439 = vmatprep.mubr.f32.mxu0 %v306_v8  ;;  %1939 = vmatpush3.msra.mxu1 %v63_v11  ;;  %v102_v46 = vld [vmem:[%s3323_s1 + $0x238] sm:$0xff]  ;;  %v101_v50 = vld [vmem:[%s3323_s1 + $0x230] sm:$0xff]  ;;  %v148_v54 = vld [vmem:[%s3323_s1 + $0x3a8] sm:$0xff] }
  0x24   :  { %509 = vmatprep.mubr.f32.mxu1 %v307_v10  ;;  %440 = vmatmul.mubr.f32.vlgmr.msra.gmra.mxu0 %v298_v62  ;;  %v134_v47 = vld [vmem:[%s3323_s1 + $0x338] sm:$0xff]  ;;  %v133_v52 = vld [vmem:[%s3323_s1 + $0x330] sm:$0xff]  ;;  %v100_v55 = vld [vmem:[%s3323_s1 + $0x228] sm:$0xff] }
  0x25   :  { %510 = vmatmul.mubr.f32.vlgmr.msra.gmra.mxu1 %v305_v1  ;;  %1943 = vmatprep.subr.mxu0 %v126_v12  ;;  %v132_v56 = vld [vmem:[%s3323_s1 + $0x328] sm:$0xff]  ;;  %v115_v58 = vld [vmem:[%s3323_s1 + $0x2a0] sm:$0xff]  ;;  %v114_v62 = vld [vmem:[%s3323_s1 + $0x298] sm:$0xff] }
  0x26   :  { %1978 = vmatprep.subr.mxu1 %v158_v13  ;;  %1944 = vmatpush3.msra.mxu0 %v110_v14  ;;  %v28_v57 = vld [vmem:[%s3322_s0 + $0x8] sm:$0xff]  ;;  %v147_v59 = vld [vmem:[%s3323_s1 + $0x3a0] sm:$0xff]  ;;  %v146_v63 = vld [vmem:[%s3323_s1 + $0x398] sm:$0xff] }
  0x27   :  { %1979 = vmatpush3.msra.mxu1 %v142_v15  ;;  %1945 = vmatprep.subr.mxu0 %v125_v16  ;;  %v99_v60 = vld [vmem:[%s3323_s1 + $0x220] sm:$0xff]  ;;  %v308_v0 = vcombine.high %v28_v57, %v28_v57  ;;  %v98_v1 = vld [vmem:[%s3323_s1 + $0x218] sm:$0xff]  ;;  %v113_v3 = vld [vmem:[%s3323_s1 + $0x290] sm:$0xff]  ;;  %v315_v5 = vrot.slane %v28_v57, %v2394_v51 }
  0x28   :  { %1980 = vmatprep.subr.mxu1 %v157_v17  ;;  %1946 = vmatpush3.msra.mxu0 %v109_v18  ;;  %v131_v61 = vld [vmem:[%s3323_s1 + $0x320] sm:$0xff]  ;;  %v130_v2 = vld [vmem:[%s3323_s1 + $0x318] sm:$0xff]  ;;  %v145_v4 = vld [vmem:[%s3323_s1 + $0x390] sm:$0xff] }
  0x29   :  { %1981 = vmatpush3.msra.mxu1 %v141_v19  ;;  %1947 = vmatprep.subr.mxu0 %v124_v20  ;;  %v97_v6 = vld [vmem:[%s3323_s1 + $0x210] sm:$0xff]  ;;  %v112_v8 = vld [vmem:[%s3323_s1 + $0x288] sm:$0xff]  ;;  %v322_v10 = vrot.slane %v308_v0, %v2394_v51  ;;  %v111_v13 = vld [vmem:[%s3323_s1 + $0x280] sm:$0xff]  ;;  %v323_v15 = vcombine.high %v315_v5, %v315_v5 }
  0x2a   :  { %1982 = vmatprep.subr.mxu1 %v156_v21  ;;  %1948 = vmatpush3.msra.mxu0 %v108_v22  ;;  %v129_v7 = vld [vmem:[%s3323_s1 + $0x310] sm:$0xff]  ;;  %v144_v9 = vld [vmem:[%s3323_s1 + $0x388] sm:$0xff]  ;;  %v143_v14 = vld [vmem:[%s3323_s1 + $0x380] sm:$0xff] }
  0x2b   :  { %1983 = vmatpush3.msra.mxu1 %v140_v23  ;;  %1949 = vmatprep.subr.mxu0 %v123_v24  ;;  %v96_v11 = vld [vmem:[%s3323_s1 + $0x208] sm:$0xff]  ;;  %v95_v16 = vld [vmem:[%s3323_s1 + $0x200] sm:$0xff]  ;;  %v324_v18 = vcombine.high %v322_v10, %v322_v10  ;;  %v190_v19 = vld [vmem:[%s3323_s1 + $0x4f8] sm:$0xff] }
  0x2c   :  { %1984 = vmatprep.subr.mxu1 %v155_v25  ;;  %1950 = vmatpush3.msra.mxu0 %v107_v26  ;;  %v128_v12 = vld [vmem:[%s3323_s1 + $0x308] sm:$0xff]  ;;  %v127_v17 = vld [vmem:[%s3323_s1 + $0x300] sm:$0xff]  ;;  %v222_v20 = vld [vmem:[%s3323_s1 + $0x5f8] sm:$0xff] }
  0x2d   :  { %1985 = vmatpush3.msra.mxu1 %v139_v27  ;;  %1951 = vmatprep.subr.mxu0 %v122_v28  ;;  %v174_v21 = vld [vmem:[%s3323_s1 + $0x478] sm:$0xff]  ;;  %v189_v23 = vld [vmem:[%s3323_s1 + $0x4f0] sm:$0xff]  ;;  %v188_v27 = vld [vmem:[%s3323_s1 + $0x4e8] sm:$0xff] }
  0x2e   :  { %1986 = vmatprep.subr.mxu1 %v154_v29  ;;  %1952 = vmatpush3.msra.mxu0 %v106_v30  ;;  %v206_v22 = vld [vmem:[%s3323_s1 + $0x578] sm:$0xff]  ;;  %v221_v24 = vld [vmem:[%s3323_s1 + $0x5f0] sm:$0xff]  ;;  %v220_v28 = vld [vmem:[%s3323_s1 + $0x5e8] sm:$0xff] }
  0x2f   :  { %1987 = vmatpush3.msra.mxu1 %v138_v31  ;;  %1953 = vmatprep.subr.mxu0 %v121_v32  ;;  %v173_v25 = vld [vmem:[%s3323_s1 + $0x470] sm:$0xff]  ;;  %v172_v29 = vld [vmem:[%s3323_s1 + $0x468] sm:$0xff]  ;;  %v187_v31 = vld [vmem:[%s3323_s1 + $0x4e0] sm:$0xff] }
  0x30   :  { %1988 = vmatprep.subr.mxu1 %v153_v33  ;;  %1954 = vmatpush3.msra.mxu0 %v105_v34  ;;  %v205_v26 = vld [vmem:[%s3323_s1 + $0x570] sm:$0xff]  ;;  %v204_v30 = vld [vmem:[%s3323_s1 + $0x568] sm:$0xff]  ;;  %v219_v32 = vld [vmem:[%s3323_s1 + $0x5e0] sm:$0xff] }
  0x31   :  { %1989 = vmatpush3.msra.mxu1 %v137_v35  ;;  %1955 = vmatprep.subr.mxu0 %v120_v36  ;;  %v171_v33 = vld [vmem:[%s3323_s1 + $0x460] sm:$0xff]  ;;  %v186_v35 = vld [vmem:[%s3323_s1 + $0x4d8] sm:$0xff]  ;;  %v213_v57 = vld [vmem:[%s3323_s1 + $0x5b0] sm:$0xff] }
  0x32   :  { %1990 = vmatprep.subr.mxu1 %v152_v37  ;;  %1956 = vmatpush3.msra.mxu0 %v104_v38  ;;  %v203_v34 = vld [vmem:[%s3323_s1 + $0x560] sm:$0xff]  ;;  %v218_v36 = vld [vmem:[%s3323_s1 + $0x5d8] sm:$0xff] }
  0x33   :  { %1991 = vmatpush3.msra.mxu1 %v136_v39  ;;  %1957 = vmatprep.subr.mxu0 %v119_v40  ;;  %v170_v37 = vld [vmem:[%s3323_s1 + $0x458] sm:$0xff]  ;;  %v185_v39 = vld [vmem:[%s3323_s1 + $0x4d0] sm:$0xff] }
  0x34   :  { %1992 = vmatprep.subr.mxu1 %v151_v41  ;;  %1958 = vmatpush3.msra.mxu0 %v103_v42  ;;  %v202_v38 = vld [vmem:[%s3323_s1 + $0x558] sm:$0xff]  ;;  %v217_v40 = vld [vmem:[%s3323_s1 + $0x5d0] sm:$0xff] }
  0x35   :  { %1993 = vmatpush3.msra.mxu1 %v135_v43  ;;  %1959 = vmatprep.subr.mxu0 %v118_v44  ;;  %v169_v41 = vld [vmem:[%s3323_s1 + $0x450] sm:$0xff]  ;;  %v184_v43 = vld [vmem:[%s3323_s1 + $0x4c8] sm:$0xff] }
  0x36   :  { %1994 = vmatprep.subr.mxu1 %v150_v45  ;;  %1960 = vmatpush3.msra.mxu0 %v102_v46  ;;  %v201_v42 = vld [vmem:[%s3323_s1 + $0x550] sm:$0xff]  ;;  %v216_v44 = vld [vmem:[%s3323_s1 + $0x5c8] sm:$0xff] }
  0x37   :  { %1995 = vmatpush3.msra.mxu1 %v134_v47  ;;  %1961 = vmatprep.subr.mxu0 %v117_v48  ;;  %v168_v45 = vld [vmem:[%s3323_s1 + $0x448] sm:$0xff]  ;;  %v183_v47 = vld [vmem:[%s3323_s1 + $0x4c0] sm:$0xff] }
  0x38   :  { %1996 = vmatprep.subr.mxu1 %v149_v49  ;;  %1962 = vmatpush3.msra.mxu0 %v101_v50  ;;  %v200_v46 = vld [vmem:[%s3323_s1 + $0x548] sm:$0xff]  ;;  %v215_v48 = vld [vmem:[%s3323_s1 + $0x5c0] sm:$0xff] }
  0x39   :  { %1997 = vmatpush3.msra.mxu1 %v133_v52  ;;  %1963 = vmatprep.subr.mxu0 %v116_v53  ;;  %v167_v49 = vld [vmem:[%s3323_s1 + $0x440] sm:$0xff]  ;;  %v182_v52 = vld [vmem:[%s3323_s1 + $0x4b8] sm:$0xff] }
  0x3a   :  { %1998 = vmatprep.subr.mxu1 %v148_v54  ;;  %1964 = vmatpush3.msra.mxu0 %v100_v55  ;;  %v199_v50 = vld [vmem:[%s3323_s1 + $0x540] sm:$0xff]  ;;  %v214_v53 = vld [vmem:[%s3323_s1 + $0x5b8] sm:$0xff] }
  0x3b   :  { %1999 = vmatpush3.msra.mxu1 %v132_v56  ;;  %1965 = vmatprep.subr.mxu0 %v115_v58  ;;  %v166_v54 = vld [vmem:[%s3323_s1 + $0x438] sm:$0xff]  ;;  %v181_v56 = vld [vmem:[%s3323_s1 + $0x4b0] sm:$0xff] }
  0x3c   :  { %2000 = vmatprep.subr.mxu1 %v147_v59  ;;  %1966 = vmatpush3.msra.mxu0 %v99_v60  ;;  %v198_v55 = vld [vmem:[%s3323_s1 + $0x538] sm:$0xff]  ;;  %v165_v58 = vld [vmem:[%s3323_s1 + $0x430] sm:$0xff]  ;;  %v180_v60 = vld [vmem:[%s3323_s1 + $0x4a8] sm:$0xff] }
  0x3d   :  { %2001 = vmatpush3.msra.mxu1 %v131_v61  ;;  %1967 = vmatprep.subr.mxu0 %v114_v62  ;;  %v197_v59 = vld [vmem:[%s3323_s1 + $0x530] sm:$0xff]  ;;  %v212_v61 = vld [vmem:[%s3323_s1 + $0x5a8] sm:$0xff] }
  0x3e   :  { %2002 = vmatprep.subr.mxu1 %v146_v63  ;;  %1968 = vmatpush3.msra.mxu0 %v98_v1 }
  0x3f   :  { %2003 = vmatpush3.msra.mxu1 %v130_v2  ;;  %1969 = vmatprep.subr.mxu0 %v113_v3 }
  0x40   :  { %2004 = vmatprep.subr.mxu1 %v145_v4  ;;  %1970 = vmatpush3.msra.mxu0 %v97_v6 }
  0x41   :  { %2005 = vmatpush3.msra.mxu1 %v129_v7  ;;  %1971 = vmatprep.subr.mxu0 %v112_v8 }
  0x42   :  { %2006 = vmatprep.subr.mxu1 %v144_v9  ;;  %1972 = vmatpush3.msra.mxu0 %v96_v11 }
  0x43   :  { %2007 = vmatpush3.msra.mxu1 %v128_v12  ;;  %1973 = vmatprep.subr.mxu0 %v111_v13 }
  0x44   :  { %2008 = vmatprep.subr.mxu1 %v143_v14  ;;  %1974 = vmatpush3.msra.mxu0 %v95_v16 }
  0x45   :  { %579 = vmatprep.mubr.f32.mxu0 %v323_v15  ;;  %2009 = vmatpush3.msra.mxu1 %v127_v17 }
  0x46   :  { %580 = vmatmul.mubr.f32.vlgmr.msra.gmra.mxu0 %v315_v5  ;;  %649 = vmatprep.mubr.f32.mxu1 %v324_v18 }
  0x47   :  { %2013 = vmatprep.subr.mxu0 %v190_v19  ;;  %2048 = vmatprep.subr.mxu1 %v222_v20 }
  0x48   :  { %650 = vmatmul.mubr.f32.vlgmr.msra.gmra.mxu1 %v322_v10  ;;  %2014 = vmatpush3.msra.mxu0 %v174_v21 }
  0x49   :  { %2049 = vmatpush3.msra.mxu1 %v206_v22  ;;  %2015 = vmatprep.subr.mxu0 %v189_v23 }
  0x4a   :  { %2050 = vmatprep.subr.mxu1 %v221_v24  ;;  %2016 = vmatpush3.msra.mxu0 %v173_v25 }
  0x4b   :  { %2051 = vmatpush3.msra.mxu1 %v205_v26  ;;  %2017 = vmatprep.subr.mxu0 %v188_v27 }
  0x4c   :  { %2052 = vmatprep.subr.mxu1 %v220_v28  ;;  %2018 = vmatpush3.msra.mxu0 %v172_v29 }
  0x4d   :  { %2053 = vmatpush3.msra.mxu1 %v204_v30  ;;  %2019 = vmatprep.subr.mxu0 %v187_v31 }
  0x4e   :  { %2054 = vmatprep.subr.mxu1 %v219_v32  ;;  %2020 = vmatpush3.msra.mxu0 %v171_v33 }
  0x4f   :  { %2055 = vmatpush3.msra.mxu1 %v203_v34  ;;  %2021 = vmatprep.subr.mxu0 %v186_v35 }
  0x50   :  { %2056 = vmatprep.subr.mxu1 %v218_v36  ;;  %2022 = vmatpush3.msra.mxu0 %v170_v37 }
  0x51   :  { %2057 = vmatpush3.msra.mxu1 %v202_v38  ;;  %2023 = vmatprep.subr.mxu0 %v185_v39 }
  0x52   :  { %2058 = vmatprep.subr.mxu1 %v217_v40  ;;  %2024 = vmatpush3.msra.mxu0 %v169_v41 }
  0x53   :  { %2059 = vmatpush3.msra.mxu1 %v201_v42  ;;  %2025 = vmatprep.subr.mxu0 %v184_v43 }
  0x54   :  { %2060 = vmatprep.subr.mxu1 %v216_v44  ;;  %2026 = vmatpush3.msra.mxu0 %v168_v45 }
  0x55   :  { %2061 = vmatpush3.msra.mxu1 %v200_v46  ;;  %2027 = vmatprep.subr.mxu0 %v183_v47 }
  0x56   :  { %2062 = vmatprep.subr.mxu1 %v215_v48  ;;  %2028 = vmatpush3.msra.mxu0 %v167_v49 }
  0x57   :  { %2063 = vmatpush3.msra.mxu1 %v199_v50  ;;  %2029 = vmatprep.subr.mxu0 %v182_v52 }
  0x58   :  { %2064 = vmatprep.subr.mxu1 %v214_v53  ;;  %2030 = vmatpush3.msra.mxu0 %v166_v54 }
  0x59   :  { %2065 = vmatpush3.msra.mxu1 %v198_v55 }
  0x5a   :  { %12 = vsyncpa [#allocation3], 0  ;;  %2031 = vmatprep.subr.mxu0 %v181_v56  ;;  %2066 = vmatprep.subr.mxu1 %v213_v57  ;;  %v164_v62 = vld [vmem:[%s3323_s1 + $0x428] sm:$0xff]  ;;  %v2787_v0 = vld [vmem:[%s3322_s0 + $0x10] sm:$0xff]  ;;  %vm2214_vm0 = vmmov 0   ;;  %vm947_vm1 = vcmask 261120  }
  0x5b   :  { %v196_v63 = vld [vmem:[%s3323_s1 + $0x528] sm:$0xff]  ;;  %2032 = vmatpush3.msra.mxu0 %v165_v58  ;;  %2067 = vmatpush3.msra.mxu1 %v197_v59  ;;  %v179_v1 = vld [vmem:[%s3323_s1 + $0x4a0] sm:$0xff]  ;;  %v178_v5 = vld [vmem:[%s3323_s1 + $0x498] sm:$0xff]  ;;  %v325_v7 = vcombine.high %v2787_v0, %v2787_v0  ;;  %v332_v12 = vrot.slane %v2787_v0, %v2394_v51  ;;  %vm1034_vm2 = vcmask 1041408   ;;  %vm1030_vm3 = vcmask 15360  }
  0x5c   :  { %v211_v2 = vld [vmem:[%s3323_s1 + $0x5a0] sm:$0xff]  ;;  %2033 = vmatprep.subr.mxu0 %v180_v60  ;;  %2068 = vmatprep.subr.mxu1 %v212_v61  ;;  %v210_v6 = vld [vmem:[%s3323_s1 + $0x598] sm:$0xff]  ;;  %v177_v10 = vld [vmem:[%s3323_s1 + $0x490] sm:$0xff] }
  0x5d   :  { %v163_v3 = vld [vmem:[%s3323_s1 + $0x420] sm:$0xff]  ;;  %2034 = vmatpush3.msra.mxu0 %v164_v62  ;;  %2069 = vmatpush3.msra.mxu1 %v196_v63  ;;  %v162_v8 = vld [vmem:[%s3323_s1 + $0x418] sm:$0xff]  ;;  %v209_v11 = vld [vmem:[%s3323_s1 + $0x590] sm:$0xff]  ;;  %v339_v17 = vrot.slane %v325_v7, %v2394_v51  ;;  %v340_v22 = vcombine.high %v332_v12, %v332_v12 }
  0x5e   :  { %v195_v4 = vld [vmem:[%s3323_s1 + $0x520] sm:$0xff]  ;;  %2035 = vmatprep.subr.mxu0 %v179_v1  ;;  %2070 = vmatprep.subr.mxu1 %v211_v2  ;;  %v194_v9 = vld [vmem:[%s3323_s1 + $0x518] sm:$0xff]  ;;  %v161_v13 = vld [vmem:[%s3323_s1 + $0x410] sm:$0xff] }
  0x5f   :  { %2036 = vmatpush3.msra.mxu0 %v163_v3  ;;  %2071 = vmatpush3.msra.mxu1 %v195_v4  ;;  %v193_v14 = vld [vmem:[%s3323_s1 + $0x510] sm:$0xff]  ;;  %v176_v15 = vld [vmem:[%s3323_s1 + $0x488] sm:$0xff]  ;;  %v175_v20 = vld [vmem:[%s3323_s1 + $0x480] sm:$0xff]  ;;  %v341_v25 = vcombine.high %v339_v17, %v339_v17 }
  0x60   :  { %2037 = vmatprep.subr.mxu0 %v178_v5  ;;  %2072 = vmatprep.subr.mxu1 %v210_v6  ;;  %v208_v16 = vld [vmem:[%s3323_s1 + $0x588] sm:$0xff]  ;;  %v207_v21 = vld [vmem:[%s3323_s1 + $0x580] sm:$0xff]  ;;  %v254_v26 = vld [vmem:[%s3323_s1 + $0x6f8] sm:$0xff] }
  0x61   :  { %2038 = vmatpush3.msra.mxu0 %v162_v8  ;;  %2073 = vmatpush3.msra.mxu1 %v194_v9  ;;  %v160_v18 = vld [vmem:[%s3323_s1 + $0x408] sm:$0xff]  ;;  %v159_v23 = vld [vmem:[%s3323_s1 + $0x400] sm:$0xff]  ;;  %v286_v27 = vld [vmem:[%s3323_s1 + $0x7f8] sm:$0xff] }
  0x62   :  { %2039 = vmatprep.subr.mxu0 %v177_v10  ;;  %2074 = vmatprep.subr.mxu1 %v209_v11  ;;  %v192_v19 = vld [vmem:[%s3323_s1 + $0x508] sm:$0xff]  ;;  %v191_v24 = vld [vmem:[%s3323_s1 + $0x500] sm:$0xff]  ;;  %v238_v28 = vld [vmem:[%s3323_s1 + $0x678] sm:$0xff] }
  0x63   :  { %2040 = vmatpush3.msra.mxu0 %v161_v13  ;;  %2075 = vmatpush3.msra.mxu1 %v193_v14  ;;  %v270_v29 = vld [vmem:[%s3323_s1 + $0x778] sm:$0xff]  ;;  %v253_v30 = vld [vmem:[%s3323_s1 + $0x6f0] sm:$0xff]  ;;  %v252_v34 = vld [vmem:[%s3323_s1 + $0x6e8] sm:$0xff] }
  0x64   :  { %2041 = vmatprep.subr.mxu0 %v176_v15  ;;  %2076 = vmatprep.subr.mxu1 %v208_v16  ;;  %v285_v31 = vld [vmem:[%s3323_s1 + $0x7f0] sm:$0xff]  ;;  %v284_v35 = vld [vmem:[%s3323_s1 + $0x7e8] sm:$0xff]  ;;  %v251_v38 = vld [vmem:[%s3323_s1 + $0x6e0] sm:$0xff] }
  0x65   :  { %2042 = vmatpush3.msra.mxu0 %v160_v18  ;;  %2077 = vmatpush3.msra.mxu1 %v192_v19  ;;  %v237_v32 = vld [vmem:[%s3323_s1 + $0x670] sm:$0xff]  ;;  %v236_v36 = vld [vmem:[%s3323_s1 + $0x668] sm:$0xff]  ;;  %v283_v39 = vld [vmem:[%s3323_s1 + $0x7e0] sm:$0xff] }
  0x66   :  { %2043 = vmatprep.subr.mxu0 %v175_v20  ;;  %2078 = vmatprep.subr.mxu1 %v207_v21  ;;  %v269_v33 = vld [vmem:[%s3323_s1 + $0x770] sm:$0xff]  ;;  %v268_v37 = vld [vmem:[%s3323_s1 + $0x768] sm:$0xff]  ;;  %v235_v40 = vld [vmem:[%s3323_s1 + $0x660] sm:$0xff] }
  0x67   :  { %2044 = vmatpush3.msra.mxu0 %v159_v23  ;;  %719 = vmatprep.mubr.f32.mxu0 %v340_v22  ;;  %v267_v41 = vld [vmem:[%s3323_s1 + $0x760] sm:$0xff]  ;;  %v250_v42 = vld [vmem:[%s3323_s1 + $0x6d8] sm:$0xff]  ;;  %v249_v46 = vld [vmem:[%s3323_s1 + $0x6d0] sm:$0xff] }
  0x68   :  { %2079 = vmatpush3.msra.mxu1 %v191_v24  ;;  %720 = vmatmul.mubr.f32.vlgmr.msra.gmra.mxu0 %v332_v12  ;;  %v282_v43 = vld [vmem:[%s3323_s1 + $0x7d8] sm:$0xff]  ;;  %v281_v47 = vld [vmem:[%s3323_s1 + $0x7d0] sm:$0xff]  ;;  %v248_v50 = vld [vmem:[%s3323_s1 + $0x6c8] sm:$0xff] }
  0x69   :  { %789 = vmatprep.mubr.f32.mxu1 %v341_v25  ;;  %2083 = vmatprep.subr.mxu0 %v254_v26  ;;  %v234_v44 = vld [vmem:[%s3323_s1 + $0x658] sm:$0xff]  ;;  %v233_v48 = vld [vmem:[%s3323_s1 + $0x650] sm:$0xff]  ;;  %v280_v52 = vld [vmem:[%s3323_s1 + $0x7c8] sm:$0xff] }
  0x6a   :  { %2118 = vmatprep.subr.mxu1 %v286_v27  ;;  %790 = vmatmul.mubr.f32.vlgmr.msra.gmra.mxu1 %v339_v17  ;;  %v266_v45 = vld [vmem:[%s3323_s1 + $0x758] sm:$0xff]  ;;  %v265_v49 = vld [vmem:[%s3323_s1 + $0x750] sm:$0xff]  ;;  %v232_v53 = vld [vmem:[%s3323_s1 + $0x648] sm:$0xff] }
  0x6b   :  { %2084 = vmatpush3.msra.mxu0 %v238_v28  ;;  %2119 = vmatpush3.msra.mxu1 %v270_v29  ;;  %v264_v54 = vld [vmem:[%s3323_s1 + $0x748] sm:$0xff]  ;;  %v247_v55 = vld [vmem:[%s3323_s1 + $0x6c0] sm:$0xff]  ;;  %v246_v59 = vld [vmem:[%s3323_s1 + $0x6b8] sm:$0xff] }
  0x6c   :  { %2085 = vmatprep.subr.mxu0 %v253_v30  ;;  %2120 = vmatprep.subr.mxu1 %v285_v31  ;;  %v279_v56 = vld [vmem:[%s3323_s1 + $0x7c0] sm:$0xff]  ;;  %v278_v60 = vld [vmem:[%s3323_s1 + $0x7b8] sm:$0xff]  ;;  %v245_v63 = vld [vmem:[%s3323_s1 + $0x6b0] sm:$0xff] }
  0x6d   :  { %2086 = vmatpush3.msra.mxu0 %v237_v32  ;;  %2121 = vmatpush3.msra.mxu1 %v269_v33  ;;  %v231_v57 = vld [vmem:[%s3323_s1 + $0x640] sm:$0xff]  ;;  %v230_v61 = vld [vmem:[%s3323_s1 + $0x638] sm:$0xff]  ;;  %v277_v1 = vld [vmem:[%s3323_s1 + $0x7b0] sm:$0xff] }
  0x6e   :  { %2087 = vmatprep.subr.mxu0 %v252_v34  ;;  %2122 = vmatprep.subr.mxu1 %v284_v35  ;;  %v263_v58 = vld [vmem:[%s3323_s1 + $0x740] sm:$0xff]  ;;  %v262_v62 = vld [vmem:[%s3323_s1 + $0x738] sm:$0xff]  ;;  %v229_v2 = vld [vmem:[%s3323_s1 + $0x630] sm:$0xff]  ;;  %v2213_v34 = vmov 0.0  }
  0x6f   :  { %2088 = vmatpush3.msra.mxu0 %v236_v36  ;;  %2123 = vmatpush3.msra.mxu1 %v268_v37  ;;  %v261_v3 = vld [vmem:[%s3323_s1 + $0x730] sm:$0xff]  ;;  %v244_v4 = vld [vmem:[%s3323_s1 + $0x6a8] sm:$0xff]  ;;  %v2983_v6 = vld [vmem:[%s3322_s0 + $0x18] sm:$0xff] }
  0x70   :  { %2089 = vmatprep.subr.mxu0 %v251_v38  ;;  %2124 = vmatprep.subr.mxu1 %v283_v39  ;;  %v276_v5 = vld [vmem:[%s3323_s1 + $0x7a8] sm:$0xff]  ;;  %v243_v9 = vld [vmem:[%s3323_s1 + $0x6a0] sm:$0xff]  ;;  %v342_v13 = vcombine.high %v2983_v6, %v2983_v6  ;;  %v242_v14 = vld [vmem:[%s3323_s1 + $0x698] sm:$0xff]  ;;  %v349_v20 = vrot.slane %v2983_v6, %v2394_v51 }
  0x71   :  { %2090 = vmatpush3.msra.mxu0 %v235_v40  ;;  %2125 = vmatpush3.msra.mxu1 %v267_v41  ;;  %v228_v7 = vld [vmem:[%s3323_s1 + $0x628] sm:$0xff]  ;;  %v275_v10 = vld [vmem:[%s3323_s1 + $0x7a0] sm:$0xff]  ;;  %v274_v15 = vld [vmem:[%s3323_s1 + $0x798] sm:$0xff] }
  0x72   :  { %2091 = vmatprep.subr.mxu0 %v250_v42  ;;  %2126 = vmatprep.subr.mxu1 %v282_v43  ;;  %v260_v8 = vld [vmem:[%s3323_s1 + $0x728] sm:$0xff]  ;;  %v227_v11 = vld [vmem:[%s3323_s1 + $0x620] sm:$0xff]  ;;  %v226_v16 = vld [vmem:[%s3323_s1 + $0x618] sm:$0xff]  ;;  %v356_v23 = vrot.slane %v342_v13, %v2394_v51  ;;  %v357_v30 = vcombine.high %v349_v20, %v349_v20 }
  0x73   :  { %2092 = vmatpush3.msra.mxu0 %v234_v44  ;;  %2127 = vmatpush3.msra.mxu1 %v266_v45  ;;  %v259_v12 = vld [vmem:[%s3323_s1 + $0x720] sm:$0xff]  ;;  %v258_v17 = vld [vmem:[%s3323_s1 + $0x718] sm:$0xff]  ;;  %v241_v18 = vld [vmem:[%s3323_s1 + $0x690] sm:$0xff] }
  0x74   :  { %2093 = vmatprep.subr.mxu0 %v249_v46  ;;  %2128 = vmatprep.subr.mxu1 %v281_v47  ;;  %v273_v19 = vld [vmem:[%s3323_s1 + $0x790] sm:$0xff]  ;;  %v240_v24 = vld [vmem:[%s3323_s1 + $0x688] sm:$0xff]  ;;  %v239_v28 = vld [vmem:[%s3323_s1 + $0x680] sm:$0xff]  ;;  %v358_v32 = vcombine.high %v356_v23, %v356_v23 }
  0x75   :  { %2094 = vmatpush3.msra.mxu0 %v233_v48  ;;  %2129 = vmatpush3.msra.mxu1 %v265_v49  ;;  %v225_v21 = vld [vmem:[%s3323_s1 + $0x610] sm:$0xff]  ;;  %v272_v25 = vld [vmem:[%s3323_s1 + $0x788] sm:$0xff]  ;;  %v271_v29 = vld [vmem:[%s3323_s1 + $0x780] sm:$0xff] }
  0x76   :  { %2095 = vmatprep.subr.mxu0 %v248_v50  ;;  %2130 = vmatprep.subr.mxu1 %v280_v52  ;;  %v257_v22 = vld [vmem:[%s3323_s1 + $0x710] sm:$0xff]  ;;  %v224_v26 = vld [vmem:[%s3323_s1 + $0x608] sm:$0xff]  ;;  %v223_v31 = vld [vmem:[%s3323_s1 + $0x600] sm:$0xff] }
  0x77   :  { %2096 = vmatpush3.msra.mxu0 %v232_v53  ;;  %2131 = vmatpush3.msra.mxu1 %v264_v54  ;;  %v256_v27 = vld [vmem:[%s3323_s1 + $0x708] sm:$0xff]  ;;  %v255_v33 = vld [vmem:[%s3323_s1 + $0x700] sm:$0xff]  ;;  %v939_v35 = vld [vmem:[%s3324_s2 + $0x18] sm:$0xff] }
  0x78   :  { %2097 = vmatprep.subr.mxu0 %v247_v55  ;;  %2132 = vmatprep.subr.mxu1 %v279_v56  ;;  %v938_v36 = vld [vmem:[%s3324_s2 + $0x10] sm:$0xff]  ;;  %v937_v37 = vld [vmem:[%s3324_s2 + $0x8] sm:$0xff]  ;;  %v936_v38 = vld [vmem:[%s3324_s2] sm:$0xff] }
  0x79   :  { %2098 = vmatpush3.msra.mxu0 %v231_v57  ;;  %2133 = vmatpush3.msra.mxu1 %v263_v58 }
  0x7a   :  { %2099 = vmatprep.subr.mxu0 %v246_v59  ;;  %2134 = vmatprep.subr.mxu1 %v278_v60 }
  0x7b   :  { %2100 = vmatpush3.msra.mxu0 %v230_v61  ;;  %2135 = vmatpush3.msra.mxu1 %v262_v62 }
  0x7c   :  { %2101 = vmatprep.subr.mxu0 %v245_v63  ;;  %2136 = vmatprep.subr.mxu1 %v277_v1 }
  0x7d   :  { %2102 = vmatpush3.msra.mxu0 %v229_v2  ;;  %2137 = vmatpush3.msra.mxu1 %v261_v3 }
  0x7e   :  { %2103 = vmatprep.subr.mxu0 %v244_v4  ;;  %2138 = vmatprep.subr.mxu1 %v276_v5 }
  0x7f   :  { %2104 = vmatpush3.msra.mxu0 %v228_v7  ;;  %2139 = vmatpush3.msra.mxu1 %v260_v8 }
  0x80   :  { %2105 = vmatprep.subr.mxu0 %v243_v9  ;;  %2140 = vmatprep.subr.mxu1 %v275_v10  ;;  %v1022_v10 = vld [vmem:[%s3326_s4] sm:$0x3] }
  0x81   :  { %2106 = vmatpush3.msra.mxu0 %v227_v11  ;;  %2141 = vmatpush3.msra.mxu1 %v259_v12  ;;  %v1859_v11 = vld [vmem:[%s3325_s3] ss:$0 sm:$0xff] }
  0x82   :  { %2107 = vmatprep.subr.mxu0 %v242_v14  ;;  %2142 = vmatprep.subr.mxu1 %v274_v15 }
  0x83   :  { %2108 = vmatpush3.msra.mxu0 %v226_v16  ;;  %2143 = vmatpush3.msra.mxu1 %v258_v17  ;;  %v1163_v16 = vld [vmem:[%s3328_s6 + $0x188] sm:$0xff]  ;;  %v1165_v17 = vld [vmem:[%s3328_s6 + $0x198] sm:$0xff] }
  0x84   :  { %2109 = vmatprep.subr.mxu0 %v241_v18  ;;  %2144 = vmatprep.subr.mxu1 %v273_v19  ;;  %v1162_v18 = vld [vmem:[%s3328_s6 + $0x180] sm:$0xff]  ;;  %v1164_v19 = vld [vmem:[%s3328_s6 + $0x190] sm:$0xff] }
  0x85   :  { %2110 = vmatpush3.msra.mxu0 %v225_v21  ;;  %2145 = vmatpush3.msra.mxu1 %v257_v22  ;;  %v1149_v21 = vld [vmem:[%s3328_s6 + $0x118] sm:$0xff]  ;;  %v1146_v22 = vld [vmem:[%s3328_s6 + $0x100] sm:$0xff] }
  0x86   :  { %2111 = vmatprep.subr.mxu0 %v240_v24  ;;  %2146 = vmatprep.subr.mxu1 %v272_v25  ;;  %v1131_v24 = vld [vmem:[%s3328_s6 + $0x88] sm:$0xff]  ;;  %v1133_v25 = vld [vmem:[%s3328_s6 + $0x98] sm:$0xff] }
  0x87   :  { %2112 = vmatpush3.msra.mxu0 %v224_v26  ;;  %2147 = vmatpush3.msra.mxu1 %v256_v27  ;;  %v1130_v26 = vld [vmem:[%s3328_s6 + $0x80] sm:$0xff]  ;;  %v1132_v27 = vld [vmem:[%s3328_s6 + $0x90] sm:$0xff] }
  0x88   :  { %2113 = vmatprep.subr.mxu0 %v239_v28  ;;  %2148 = vmatprep.subr.mxu1 %v271_v29  ;;  %v1115_v28 = vld [vmem:[%s3328_s6 + $0x8] sm:$0xff]  ;;  %v1117_v29 = vld [vmem:[%s3328_s6 + $0x18] sm:$0xff] }
  0x89   :  { %2114 = vmatpush3.msra.mxu0 %v223_v31  ;;  %859 = vmatprep.mubr.f32.mxu0 %v357_v30  ;;  %v1114_v30 = vld [vmem:[%s3328_s6] sm:$0xff]  ;;  %v1116_v31 = vld [vmem:[%s3328_s6 + $0x10] sm:$0xff] }
  0x8a   :  { %2149 = vmatpush3.msra.mxu1 %v255_v33  ;;  %929 = vmatprep.mubr.f32.mxu1 %v358_v32  ;;  %v1167_v32 = vld [vmem:[%s3328_s6 + $0x1a8] sm:$0xff]  ;;  %v1169_v33 = vld [vmem:[%s3328_s6 + $0x1b8] sm:$0xff] }
  0x8b   :  { %860 = vmatmul.mubr.f32.vlgmr.msra.gmra.mxu0 %v349_v20  ;;  %930 = vmatmul.mubr.f32.vlgmr.msra.gmra.mxu1 %v356_v23  ;;  %v1147_v20 = vld [vmem:[%s3328_s6 + $0x108] sm:$0xff]  ;;  %v1148_v23 = vld [vmem:[%s3328_s6 + $0x110] sm:$0xff] }
  0x8c   :  { %2160 = vmatprep.subr.mxu0 %v2213_v34  ;;  %2171 = vmatprep.subr.mxu1 %v2213_v34 }
  0x8d   :  { %2161 = vmatpush3.msra.mxu0 %v939_v35  ;;  %2168 = vmatprep.mubr.msk.f32.mxu0 %vm2214_vm0, %v2213_v34  ;;  %v1861_v35 = vld [vmem:[%s3327_s5] ss:$0 sm:$0xff] }
  0x8e   :  { %2162 = vmatprep.subr.mxu0 %v2213_v34  ;;  %2173 = vmatprep.mubr.msk.f32.mxu1 %vm2214_vm0, %v2213_v34 }
  0x8f   :  { %2163 = vmatpush3.msra.mxu0 %v938_v36  ;;  %2172 = vmatpush3.msk.msra.mxu1 %vm1034_vm2, %v1022_v10  ;;  %v1122_v10 = vld [vmem:[%s3328_s6 + $0x40] sm:$0xff] }
  0x90   :  { %2164 = vmatprep.subr.mxu0 %v2213_v34  ;;  %1205 = vmatprep.subr.mxu1 %v1163_v16  ;;  %v1159_v16 = vld [vmem:[%s3328_s6 + $0x168] sm:$0xff] }
  0x91   :  { %2165 = vmatpush3.msra.mxu0 %v937_v37 }
  0x92   :  { %2166 = vmatprep.subr.mxu0 %v2213_v34 }
  0x93   :  { %2167 = vmatpush3.msra.mxu0 %v936_v38 }
  0x94   :  { %1276 = vmatprep.subr.mxu0 %v1165_v17  ;;  %v1161_v17 = vld [vmem:[%s3328_s6 + $0x178] sm:$0xff] }
  0xe4   :  { %v1905_v39 = vpop.f32.mrf.mxu0 }
  0xe5   :  { %v1940_v40 = vpop.f32.mrf.mxu1 }
  0xe6   :  { %v1906_v41 = vpop.f32.mrf.mxu0 }
  0xe7   :  { %v1941_v43 = vpop.f32.mrf.mxu1  ;;  %v1907_v46 = vadd.f32 %v1906_v41, %v1905_v39 }
  0xe8   :  { %v1942_v47 = vadd.f32 %v1941_v43, %v1940_v40  ;;  %v1168_v43 = vld [vmem:[%s3328_s6 + $0x1b0] sm:$0xff] }
  0xea   :  { %v512_v52 = vadd.f32 %v1942_v47, %v1907_v46  ;;  %v1153_v46 = vld [vmem:[%s3328_s6 + $0x138] sm:$0xff]  ;;  %v1150_v47 = vld [vmem:[%s3328_s6 + $0x120] sm:$0xff] }
 0x106   :  { %v1975_v42 = vpop.f32.mrf.mxu0 }
 0x108   :  { %v2010_v44 = vpop.f32.mrf.mxu1  ;;  %v1976_v45 = vpop.f32.mrf.mxu0 }
 0x109   :  { %v1977_v49 = vadd.f32 %v1976_v45, %v1975_v42  ;;  %v1166_v42 = vld [vmem:[%s3328_s6 + $0x1a0] sm:$0xff]  ;;  %v1151_v45 = vld [vmem:[%s3328_s6 + $0x128] sm:$0xff] }
 0x10a   :  { %v2011_v50 = vpop.f32.mrf.mxu1 }
 0x10b   :  { %v582_v55 = vadd.f32 %v1977_v49, %v512_v52  ;;  %v2012_v56 = vadd.f32 %v2011_v50, %v2010_v44  ;;  %v1135_v49 = vld [vmem:[%s3328_s6 + $0xa8] sm:$0xff]  ;;  %v1137_v50 = vld [vmem:[%s3328_s6 + $0xb8] sm:$0xff]  ;;  %v1134_v52 = vld [vmem:[%s3328_s6 + $0xa0] sm:$0xff] }
 0x10d   :  { %v652_v59 = vadd.f32 %v2012_v56, %v582_v55  ;;  %v1121_v55 = vld [vmem:[%s3328_s6 + $0x38] sm:$0xff]  ;;  %v1118_v56 = vld [vmem:[%s3328_s6 + $0x20] sm:$0xff] }
 0x128   :  { %v2045_v48 = vpop.f32.mrf.mxu0 }
 0x12a   :  { %v2080_v53 = vpop.f32.mrf.mxu1  ;;  %v2046_v54 = vpop.f32.mrf.mxu0 }
 0x12b   :  { %v2047_v57 = vadd.f32 %v2046_v54, %v2045_v48  ;;  %v1152_v48 = vld [vmem:[%s3328_s6 + $0x130] sm:$0xff]  ;;  %v1119_v54 = vld [vmem:[%s3328_s6 + $0x28] sm:$0xff] }
 0x12c   :  { %v2081_v58 = vpop.f32.mrf.mxu1 }
 0x12d   :  { %v722_v60 = vadd.f32 %v2047_v57, %v652_v59  ;;  %v2082_v61 = vadd.f32 %v2081_v58, %v2080_v53  ;;  %v1136_v53 = vld [vmem:[%s3328_s6 + $0xb0] sm:$0xff]  ;;  %v1171_v58 = vld [vmem:[%s3328_s6 + $0x1c8] sm:$0xff]  ;;  %v1173_v59 = vld [vmem:[%s3328_s6 + $0x1d8] sm:$0xff] }
 0x12e   :  { %v1120_v57 = vld [vmem:[%s3328_s6 + $0x30] sm:$0xff] }
 0x12f   :  { %v792_v3 = vadd.f32 %v2082_v61, %v722_v60  ;;  %v1170_v60 = vld [vmem:[%s3328_s6 + $0x1c0] sm:$0xff]  ;;  %v1172_v61 = vld [vmem:[%s3328_s6 + $0x1d0] sm:$0xff] }
 0x14b   :  { %v2115_v62 = vpop.f32.mrf.mxu0  ;;  %v2150_v63 = vpop.f32.mrf.mxu1 }
 0x14d   :  { %v2116_v1 = vpop.f32.mrf.mxu0  ;;  %v2151_v2 = vpop.f32.mrf.mxu1 }
 0x14e   :  { %v2117_v4 = vadd.f32 %v2116_v1, %v2115_v62  ;;  %v2152_v7 = vadd.f32 %v2151_v2, %v2150_v63  ;;  %v1155_v62 = vld [vmem:[%s3328_s6 + $0x148] sm:$0xff]  ;;  %v1157_v63 = vld [vmem:[%s3328_s6 + $0x158] sm:$0xff]  ;;  %v1154_v1 = vld [vmem:[%s3328_s6 + $0x140] sm:$0xff] }
 0x14f   :  { %v1156_v2 = vld [vmem:[%s3328_s6 + $0x150] sm:$0xff] }
 0x150   :  { %v862_v5 = vadd.f32 %v2117_v4, %v792_v3  ;;  %v1139_v3 = vld [vmem:[%s3328_s6 + $0xc8] sm:$0xff]  ;;  %v1141_v4 = vld [vmem:[%s3328_s6 + $0xd8] sm:$0xff] }
 0x152   :  { %v932_v8 = vadd.f32 %v2152_v7, %v862_v5  ;;  %v1138_v5 = vld [vmem:[%s3328_s6 + $0xc0] sm:$0xff]  ;;  %v1140_v7 = vld [vmem:[%s3328_s6 + $0xd0] sm:$0xff] }
 0x154   :  { %v935_v9 = vmul.f32 0.015625, %v932_v8  ;;  %v1123_v8 = vld [vmem:[%s3328_s6 + $0x48] sm:$0xff] }
 0x156   :  { %2169 = vmatmul.mubr.msk.f32.vlgmr.msra.gmra.mxu0 %vm947_vm1, %v935_v9  ;;  %v1125_v9 = vld [vmem:[%s3328_s6 + $0x58] sm:$0xff] }
 0x157   :  { %1316 = vmatprep.mubr.f32.mxu0 %v2213_v34  ;;  %1277 = vmatpush1.msra.mxu0 %v1164_v19  ;;  %v1160_v19 = vld [vmem:[%s3328_s6 + $0x170] sm:$0xff] }
 0x158   :  { %1278 = vmatprep.subr.mxu0 %v1149_v21  ;;  %v1145_v21 = vld [vmem:[%s3328_s6 + $0xf8] sm:$0xff] }
 0x159   :  { %1279 = vmatpush1.msra.mxu0 %v1148_v23  ;;  %v1144_v23 = vld [vmem:[%s3328_s6 + $0xf0] sm:$0xff] }
 0x15a   :  { %1280 = vmatprep.subr.mxu0 %v1133_v25  ;;  %v1129_v25 = vld [vmem:[%s3328_s6 + $0x78] sm:$0xff] }
 0x15b   :  { %1281 = vmatpush1.msra.mxu0 %v1132_v27  ;;  %v1128_v27 = vld [vmem:[%s3328_s6 + $0x70] sm:$0xff] }
 0x15c   :  { %1282 = vmatprep.subr.mxu0 %v1117_v29 }
 0x15d   :  { %1283 = vmatpush1.msra.mxu0 %v1116_v31 }
 0x15e   :  { %1418 = vmatprep.subr.mxu0 %v1169_v33 }
 0x216   :  { %v1017_v12 = vpop.f32.mrf.mxu0 }
 0x217   :  { %v1018_v13 = vadd.f32 %v1859_v11, %v1017_v12  ;;  %v1124_v11 = vld [vmem:[%s3328_s6 + $0x50] sm:$0xff]  ;;  %v1175_v12 = vld [vmem:[%s3328_s6 + $0x1e8] sm:$0xff] }
 0x218   :  { %v2170_v14 = vpop.f32.mrf.mxu0 }
 0x219   :  { %v1021_v15 = vmax.f32 %v1018_v13, 0.0  ;;  %v1177_v13 = vld [vmem:[%s3328_s6 + $0x1f8] sm:$0xff]  ;;  %v1174_v14 = vld [vmem:[%s3328_s6 + $0x1e0] sm:$0xff] }
 0x21b   :  { %2174 = vmatmul.mubr.msk.f32.vlgmr.msra.gmra.mxu1 %vm1030_vm3, %v1021_v15  ;;  %v1176_v15 = vld [vmem:[%s3328_s6 + $0x1f0] sm:$0xff] }
 0x21c   :  { %1245 = vmatprep.mubr.f32.mxu1 %v2213_v34  ;;  %1206 = vmatpush1.msra.mxu1 %v1162_v18  ;;  %v1158_v18 = vld [vmem:[%s3328_s6 + $0x160] sm:$0xff] }
 0x21d   :  { %1207 = vmatprep.subr.mxu1 %v1147_v20  ;;  %v1143_v20 = vld [vmem:[%s3328_s6 + $0xe8] sm:$0xff] }
 0x21e   :  { %1208 = vmatpush1.msra.mxu1 %v1146_v22  ;;  %v1142_v22 = vld [vmem:[%s3328_s6 + $0xe0] sm:$0xff] }
 0x21f   :  { %1209 = vmatprep.subr.mxu1 %v1131_v24  ;;  %v1127_v24 = vld [vmem:[%s3328_s6 + $0x68] sm:$0xff] }
 0x220   :  { %1210 = vmatpush1.msra.mxu1 %v1130_v26  ;;  %v1126_v26 = vld [vmem:[%s3328_s6 + $0x60] sm:$0xff] }
 0x221   :  { %1211 = vmatprep.subr.mxu1 %v1115_v28 }
 0x222   :  { %1212 = vmatpush1.msra.mxu1 %v1114_v30 }
 0x223   :  { %1347 = vmatprep.subr.mxu1 %v1167_v32 }
 0x2db   :  { %v1104_v36 = vpop.f32.mrf.mxu1 }
 0x2dc   :  { %v1105_v37 = vadd.f32 %v1861_v35, %v1104_v36 }
 0x2dd   :  { %v2175_v38 = vpop.f32.mrf.mxu1 }
 0x2de   :  { %v1864_v39 = vmul.f32 -1.442695, %v1105_v37 }
 0x2e0   :  { %2184 = vpow2.f32 %v1864_v39 }
 0x2ed   :  { %v2185_v40 = vpop.eup %2184 }
 0x2ee   :  { %v1111_v41 = vadd.f32 1.0, %v2185_v40 }
 0x2f0   :  { %2186 = vrcp.f32 %v1111_v41 }
 0x2fd   :  { %v3147_v44 = vpop.eup %2186 }
 0x2fe   :  { %1865 = vmatmul.mubr.msk.f32.vlgmr.msra.gmra.mxu1 %vm947_vm1, %v3147_v44  ;;  %1866 = vmatmul.mubr.msk.f32.vlgmr.msra.gmra.mxu0 %vm947_vm1, %v3147_v44 }
 0x2ff   :  { %1348 = vmatpush1.msra.mxu1 %v1166_v42  ;;  %1419 = vmatpush1.msra.mxu0 %v1168_v43 }
 0x300   :  { %1349 = vmatprep.subr.mxu1 %v1151_v45  ;;  %1420 = vmatprep.subr.mxu0 %v1153_v46 }
 0x301   :  { %1350 = vmatpush1.msra.mxu1 %v1150_v47  ;;  %1421 = vmatpush1.msra.mxu0 %v1152_v48  ;;  %v2189_v48 = vld [vmem:[%s3322_s0 + $0x8] sm:$0xff] }
 0x302   :  { %1351 = vmatprep.subr.mxu1 %v1135_v49  ;;  %1422 = vmatprep.subr.mxu0 %v1137_v50 }
 0x303   :  { %1352 = vmatpush1.msra.mxu1 %v1134_v52  ;;  %1423 = vmatpush1.msra.mxu0 %v1136_v53 }
 0x304   :  { %1353 = vmatprep.subr.mxu1 %v1119_v54  ;;  %1424 = vmatprep.subr.mxu0 %v1121_v55 }
 0x305   :  { %1354 = vmatpush1.msra.mxu1 %v1118_v56  ;;  %1387 = vmatprep.mubr.f32.mxu1 %v2213_v34 }
 0x306   :  { %1425 = vmatpush1.msra.mxu0 %v1120_v57  ;;  %1458 = vmatprep.mubr.f32.mxu0 %v2213_v34 }
 0x307   :  { %1867 = vmatmul.mubr.msk.f32.vlgmr.msra.gmra.mxu1 %vm947_vm1, %v3147_v44  ;;  %1868 = vmatmul.mubr.msk.f32.vlgmr.msra.gmra.mxu0 %vm947_vm1, %v3147_v44 }
 0x308   :  { %1489 = vmatprep.subr.mxu1 %v1171_v58  ;;  %1560 = vmatprep.subr.mxu0 %v1173_v59 }
 0x309   :  { %1490 = vmatpush1.msra.mxu1 %v1170_v60  ;;  %1561 = vmatpush1.msra.mxu0 %v1172_v61 }
 0x30a   :  { %1491 = vmatprep.subr.mxu1 %v1155_v62  ;;  %1562 = vmatprep.subr.mxu0 %v1157_v63 }
 0x30b   :  { %1492 = vmatpush1.msra.mxu1 %v1154_v1  ;;  %1563 = vmatpush1.msra.mxu0 %v1156_v2 }
 0x30c   :  { %1493 = vmatprep.subr.mxu1 %v1139_v3  ;;  %1564 = vmatprep.subr.mxu0 %v1141_v4 }
 0x30d   :  { %1494 = vmatpush1.msra.mxu1 %v1138_v5  ;;  %1565 = vmatpush1.msra.mxu0 %v1140_v7 }
 0x30e   :  { %1495 = vmatprep.subr.mxu1 %v1123_v8  ;;  %1566 = vmatprep.subr.mxu0 %v1125_v9 }
 0x30f   :  { %1496 = vmatpush1.msra.mxu1 %v1122_v10  ;;  %1529 = vmatprep.mubr.f32.mxu1 %v2213_v34 }
 0x310   :  { %1567 = vmatpush1.msra.mxu0 %v1124_v11  ;;  %1600 = vmatprep.mubr.f32.mxu0 %v2213_v34 }
 0x311   :  { %1869 = vmatmul.mubr.msk.f32.vlgmr.msra.gmra.mxu1 %vm947_vm1, %v3147_v44  ;;  %1870 = vmatmul.mubr.msk.f32.vlgmr.msra.gmra.mxu0 %vm947_vm1, %v3147_v44 }
 0x312   :  { %1631 = vmatprep.subr.mxu1 %v1175_v12  ;;  %1702 = vmatprep.subr.mxu0 %v1177_v13 }
 0x313   :  { %1632 = vmatpush1.msra.mxu1 %v1174_v14  ;;  %1703 = vmatpush1.msra.mxu0 %v1176_v15 }
 0x314   :  { %1633 = vmatprep.subr.mxu1 %v1159_v16  ;;  %1704 = vmatprep.subr.mxu0 %v1161_v17 }
 0x315   :  { %1634 = vmatpush1.msra.mxu1 %v1158_v18  ;;  %1705 = vmatpush1.msra.mxu0 %v1160_v19 }
 0x316   :  { %1635 = vmatprep.subr.mxu1 %v1143_v20  ;;  %1706 = vmatprep.subr.mxu0 %v1145_v21 }
 0x317   :  { %1636 = vmatpush1.msra.mxu1 %v1142_v22  ;;  %1707 = vmatpush1.msra.mxu0 %v1144_v23 }
 0x318   :  { %1637 = vmatprep.subr.mxu1 %v1127_v24  ;;  %1708 = vmatprep.subr.mxu0 %v1129_v25 }
 0x319   :  { %1638 = vmatpush1.msra.mxu1 %v1126_v26  ;;  %1671 = vmatprep.mubr.f32.mxu1 %v2213_v34 }
 0x31a   :  { %1709 = vmatpush1.msra.mxu0 %v1128_v27  ;;  %1742 = vmatprep.mubr.f32.mxu0 %v2213_v34  ;;  %v2188_v34 = vld [vmem:[%s3322_s0] sm:$0xff]  ;;  %s2215_s0 = smov [#allocation2]  }
 0x31b   :  { %1871 = vmatmul.mubr.msk.f32.vlgmr.msra.gmra.mxu1 %vm947_vm1, %v3147_v44  ;;  %1872 = vmatmul.mubr.msk.f32.vlgmr.msra.gmra.mxu0 %vm947_vm1, %v3147_v44  ;;  %s1851_s20 = sshll.u32 %s2215_s0, 4  ;;  %s1852_s20 = int_to_ptr.vmem [resolvable:$true] %s1851_s20 }
 0x31c   :  { %s2190_s21 = scalar_lea.vmem %s1852_s20, 512  ;;  %p2195_p1 = scmp.lt.s32.totalorder %s1852_s20, %s1852_s20 }
 0x31d   :  { %p2191_p0 = scmp.ne.s32.totalorder %s1852_s20, %s2190_s21  ;;  %p2196_p2 = scmp.lt.s32.totalorder %s2190_s21, %s2190_s21 }
 0x31f   :  { %p2197_p3 = por %p2196_p2, %p2195_p1 }
 0x321   :  { %p2198_p4 = pnand %p2197_p3, %p2191_p0 }
 0x3be   :  { %v1247_v28 = vpop.f32.mrf.mxu1  ;;  %v1318_v29 = vpop.f32.mrf.mxu0 }
 0x3c0   :  { %v1249_v30 = vpop.f32.mrf.mxu1  ;;  %v1320_v31 = vpop.f32.mrf.mxu0 }
 0x3c1   :  { %v1765_v32 = vcombine.low %v1247_v28, %v1249_v30  ;;  %v1766_v33 = vcombine.low %v1318_v29, %v1320_v31 }
 0x3c3   :  { %v1773_v35 = vrot.slane %v1765_v32, %v2394_v51  ;;  %v1780_v36 = vrot.slane %v1766_v33, %v2394_v51 }
 0x3c5   :  { %v1781_v37 = vcombine.low %v1773_v35, %v1780_v36 }
 0x3c7   :  { %v1837_v38 = vmul.f32 %v2188_v34, %v1781_v37  ;;  %v1389_v39 = vpop.f32.mrf.mxu1  ;;  %v1460_v40 = vpop.f32.mrf.mxu0 }
 0x3c9   :  { %1841 = vst [vmem:[#allocation2] sm:$0xff] %v1837_v38  ;;  %v1391_v41 = vpop.f32.mrf.mxu1  ;;  %v1462_v42 = vpop.f32.mrf.mxu0 }
 0x3ca   :  { %v1782_v43 = vcombine.low %v1389_v39, %v1391_v41  ;;  %v1783_v44 = vcombine.low %v1460_v40, %v1462_v42 }
 0x3cc   :  { %v1790_v45 = vrot.slane %v1782_v43, %v2394_v51  ;;  %v1797_v46 = vrot.slane %v1783_v44, %v2394_v51 }
 0x3ce   :  { %v1798_v47 = vcombine.low %v1790_v45, %v1797_v46 }
 0x3d0   :  { %v1838_v49 = vmul.f32 %v2189_v48, %v1798_v47 }
 0x3d1   :  { %v1531_v50 = vpop.f32.mrf.mxu1  ;;  %v1602_v52 = vpop.f32.mrf.mxu0 }
 0x3d2   :  { %1842 = vst [vmem:[#allocation2 + $0x8] sm:$0xff] %v1838_v49 }
 0x3d3   :  { %v1533_v53 = vpop.f32.mrf.mxu1  ;;  %v1604_v54 = vpop.f32.mrf.mxu0 }
 0x3d4   :  { %v1799_v55 = vcombine.low %v1531_v50, %v1533_v53  ;;  %v1800_v56 = vcombine.low %v1602_v52, %v1604_v54 }
 0x3d6   :  { %v1807_v57 = vrot.slane %v1799_v55, %v2394_v51  ;;  %v1814_v58 = vrot.slane %v1800_v56, %v2394_v51 }
 0x3d8   :  { %v1815_v59 = vcombine.low %v1807_v57, %v1814_v58 }
 0x3da   :  { %v1839_v60 = vmul.f32 %v1815_v59, %v2787_v0 }
 0x3db   :  { %v1673_v61 = vpop.f32.mrf.mxu1  ;;  %v1744_v62 = vpop.f32.mrf.mxu0 }
 0x3dc   :  { %1843 = vst [vmem:[#allocation2 + $0x10] sm:$0xff] %v1839_v60 }
 0x3dd   :  { %v1675_v63 = vpop.f32.mrf.mxu1  ;;  %v1746_v1 = vpop.f32.mrf.mxu0 }
 0x3de   :  { %v1816_v2 = vcombine.low %v1673_v61, %v1675_v63  ;;  %v1817_v3 = vcombine.low %v1744_v62, %v1746_v1 }
 0x3e0   :  { %v1824_v4 = vrot.slane %v1816_v2, %v2394_v51  ;;  %v1831_v5 = vrot.slane %v1817_v3, %v2394_v51 }
 0x3e2   :  { %v1832_v7 = vcombine.low %v1824_v4, %v1831_v5 }
 0x3e4   :  { %v1840_v8 = vmul.f32 %v1832_v7, %v2983_v6 }
 0x3e6   :  { %1844 = vst [vmem:[#allocation2 + $0x18] sm:$0xff] %v1840_v8 }
 0x3e7   :  { %2201 = shalt.err (!%p2198_p4)
}
 0x3e8   :  { %1854 = dma.vmem_to_hbm [thread:$0]  %s1852_s20, 512, %s3329_s7, [#allocation3]  }
 0x3e9   :  { %2210 = dma.done.wait [#allocation3], 512  }
 0x3ea   :  { %2211 = vsyncadd [#allocation3], 4294966784 }
 0x3eb   :  { %1858 = vsyncpa [#allocation3], 1 }

</bundles_post_ra>
